<compile_context>
chip_gen: v7x
topology: tpu7x:2x2x1
jax: 0.10.0
libtpu: 0.0.40
codegen_flags: <defaults>
</compile_context>

<pallas_src>
import functools

import jax
import jax.numpy as jnp
import numpy as np
from jax.experimental import pallas as pl
from jax.experimental.pallas import tpu as pltpu


# ----------------------------------------------------------------------------
# Fused Pallas matmul:  O = relu?( A @ B + bias (+ residual) )
#   A: (Mp, Kp) bf16, B: (Kp, Np) bf16, bias: (1, Np) f32, residual: (Mp, Np) f32
# ----------------------------------------------------------------------------
def _mm_kernel(*refs, relu, has_res, multi_k):
    if has_res:
        a_ref, b_ref, bias_ref, res_ref, o_ref = refs[:5]
        scratch = refs[5:]
    else:
        a_ref, b_ref, bias_ref, o_ref = refs[:4]
        res_ref = None
        scratch = refs[4:]

    if multi_k:
        acc_ref = scratch[0]

        @pl.when(pl.program_id(2) == 0)
        def _():
            acc_ref[...] = jnp.zeros_like(acc_ref)

        acc_ref[...] += jnp.dot(a_ref[...], b_ref[...],
                                preferred_element_type=jnp.float32)

        @pl.when(pl.program_id(2) == pl.num_programs(2) - 1)
        def _():
            out = acc_ref[...] + bias_ref[...]
            if res_ref is not None:
                out = out + res_ref[...]
            if relu:
                out = jnp.maximum(out, 0.0)
            o_ref[...] = out.astype(o_ref.dtype)
    else:
        out = jnp.dot(a_ref[...], b_ref[...],
                      preferred_element_type=jnp.float32) + bias_ref[...]
        if res_ref is not None:
            out = out + res_ref[...]
        if relu:
            out = jnp.maximum(out, 0.0)
        o_ref[...] = out.astype(o_ref.dtype)


def _round_up(x, m):
    return ((x + m - 1) // m) * m


def _pick_tiles(M, K, N):
    # Lane (last) dims: multiples of 128. Sublane dims: multiples of 16
    # (safe for bf16 packing).
    Kp128 = _round_up(K, 128)
    tk = Kp128 if Kp128 <= 2048 else 512        # single K step when it fits
    Kp = _round_up(K, tk)

    Np128 = _round_up(N, 128)
    tn = min(512, Np128)
    Np = _round_up(N, tn)

    tm = min(256, _round_up(M, 16))
    Mp = _round_up(M, tm)

    # v7x has 2 TensorCores: ensure >=2 blocks on a parallel axis so both
    # cores get work (harmless extra grid step on single-core v5e/v6e).
    if Mp // tm == 1 and Np // tn == 1 and tm % 32 == 0:
        tm //= 2
        Mp = _round_up(M, tm)
    return tm, tk, tn, Mp, Kp, Np


def matmul_bias(a, b, bias, *, residual=None, relu=False):
    """a: (M, K) f32/bf16, b: (K, N) bf16, bias: (N,) f32 -> (M, N) f32."""
    M, K = a.shape
    K2, N = b.shape
    assert K == K2
    tm, tk, tn, Mp, Kp, Np = _pick_tiles(M, K, N)

    a_p = jnp.pad(a, ((0, Mp - M), (0, Kp - K))).astype(jnp.bfloat16)
    b_p = jnp.pad(b.astype(jnp.bfloat16), ((0, Kp - K), (0, Np - N)))
    bias_p = jnp.pad(bias.astype(jnp.float32), (0, Np - N)).reshape(1, Np)

    grid = (Mp // tm, Np // tn, Kp // tk)
    multi_k = grid[2] > 1

    in_specs = [
        pl.BlockSpec((tm, tk), lambda i, j, k: (i, k)),
        pl.BlockSpec((tk, tn), lambda i, j, k: (k, j)),
        pl.BlockSpec((1, tn), lambda i, j, k: (0, j)),
    ]
    args = [a_p, b_p, bias_p]
    if residual is not None:
        res_p = jnp.pad(residual.astype(jnp.float32),
                        ((0, Mp - M), (0, Np - N)))
        in_specs.append(pl.BlockSpec((tm, tn), lambda i, j, k: (i, j)))
        args.append(res_p)

    scratch = [pltpu.VMEM((tm, tn), jnp.float32)] if multi_k else []

    out = pl.pallas_call(
        functools.partial(_mm_kernel, relu=relu,
                          has_res=residual is not None, multi_k=multi_k),
        out_shape=jax.ShapeDtypeStruct((Mp, Np), jnp.float32),
        grid_spec=pltpu.PrefetchScalarGridSpec(
            num_scalar_prefetch=0,
            grid=grid,
            in_specs=in_specs,
            out_specs=pl.BlockSpec((tm, tn), lambda i, j, k: (i, j)),
            scratch_shapes=scratch,
        ),
        compiler_params=pltpu.CompilerParams(
            dimension_semantics=("parallel", "parallel", "arbitrary")),
    )(*args)
    return out[:M, :N]


# ----------------------------------------------------------------------------
# Plain-JAX glue: NHWC im2col (patch order = (kh, kw, C))
# ----------------------------------------------------------------------------
def im2col_nhwc(x, kh, kw, stride, padding):
    N, H, W, C = x.shape
    if padding > 0:
        x = jnp.pad(x, ((0, 0), (padding, padding), (padding, padding), (0, 0)))
        H += 2 * padding
        W += 2 * padding
    Ho = (H - kh) // stride + 1
    Wo = (W - kw) // stride + 1
    cols = []
    for i in range(kh):
        for j in range(kw):
            cols.append(x[:, i:i + stride * Ho:stride,
                          j:j + stride * Wo:stride, :])
    col = jnp.concatenate(cols, axis=-1)              # (N, Ho, Wo, kh*kw*C)
    return col.reshape(N * Ho * Wo, kh * kw * C), Ho, Wo


# ----------------------------------------------------------------------------
# Parameter preparation: fold eval-mode BN into conv weights, pre-transpose,
# pre-cast to bf16 (done once, off the hot path).
# ----------------------------------------------------------------------------
def fold_bn_into_conv(w, bn, eps=1e-5):
    scale = bn['gamma'] / jnp.sqrt(bn['var'] + eps)           # (O,)
    w_f = w * scale[:, None, None, None]
    b_f = bn['beta'] - bn['mean'] * scale
    return w_f, b_f


def conv_w_to_mat(w):
    # (O, C, kh, kw) -> (kh*kw*C, O), matching NHWC im2col patch order.
    O, C, kh, kw = w.shape
    return w.transpose(2, 3, 1, 0).reshape(kh * kw * C, O)


def prepare_basic_block(raw):
    bp = {'stride': raw['stride']}
    w1, b1 = fold_bn_into_conv(raw['conv1_w'], raw['bn1'])
    bp['w1'] = conv_w_to_mat(w1).astype(jnp.bfloat16)
    bp['b1'] = b1
    bp['planes'] = raw['conv1_w'].shape[0]

    w2, b2 = fold_bn_into_conv(raw['conv2_w'], raw['bn2'])
    w2m = conv_w_to_mat(w2)
    if 'sc_w' in raw:
        wsc, bsc = fold_bn_into_conv(raw['sc_w'], raw['sc_bn'])
        wscm = conv_w_to_mat(wsc)                     # (C_in, planes)
        # Fuse the projection shortcut into conv2's matmul via K-concat.
        bp['w2sc'] = jnp.concatenate([w2m, wscm], axis=0).astype(jnp.bfloat16)
        bp['b2sc'] = b2 + bsc
        bp['has_proj'] = True
    else:
        bp['w2'] = w2m.astype(jnp.bfloat16)
        bp['b2'] = b2
        bp['has_proj'] = False
    return bp


# ----------------------------------------------------------------------------
# BasicBlock forward (Pallas): relu(bn2(conv2(relu(bn1(conv1(x))))) + shortcut(x))
# ----------------------------------------------------------------------------
def basic_block_forward(x_nchw, bp):
    x = jnp.transpose(x_nchw, (0, 2, 3, 1)).astype(jnp.float32)   # NHWC
    N, H, W, C = x.shape
    s = bp['stride']
    P = bp['planes']

    # conv1 + bn1 + relu (one fused matmul)
    col1, Ho, Wo = im2col_nhwc(x, 3, 3, s, 1)
    out1 = matmul_bias(col1, bp['w1'], bp['b1'], relu=True)       # (N*Ho*Wo, P)
    out1_img = out1.reshape(N, Ho, Wo, P)

    # conv2 + bn2 + shortcut + relu (one fused matmul)
    col2, _, _ = im2col_nhwc(out1_img, 3, 3, 1, 1)
    if bp['has_proj']:
        # 1x1 stride-s shortcut: just spatial subsampling, fused via K-concat.
        x_s = x[:, ::s, ::s, :][:, :Ho, :Wo, :]
        a2 = jnp.concatenate([col2, x_s.reshape(N * Ho * Wo, C)], axis=1)
        out2 = matmul_bias(a2, bp['w2sc'], bp['b2sc'], relu=True)
    else:
        res = x.reshape(N * H * W, C)                 # identity shortcut
        out2 = matmul_bias(col2, bp['w2'], bp['b2'], residual=res, relu=True)

    return out2.reshape(N, Ho, Wo, P).transpose(0, 3, 1, 2)       # NCHW


# ----------------------------------------------------------------------------
# Reference (plain JAX, f32) for correctness
# ----------------------------------------------------------------------------
def _bn_ref(x, bn, eps=1e-5):
    g = bn['gamma'].reshape(1, -1, 1, 1)
    b = bn['beta'].reshape(1, -1, 1, 1)
    m = bn['mean'].reshape(1, -1, 1, 1)
    v = bn['var'].reshape(1, -1, 1, 1)
    return (x - m) * g / jnp.sqrt(v + eps) + b


def _conv_ref(x, w, stride, padding):
    return jax.lax.conv_general_dilated(
        x, w, (stride, stride), [(padding, padding)] * 2,
        dimension_numbers=('NCHW', 'OIHW', 'NCHW'),
        precision=jax.lax.Precision.HIGHEST)


def basic_block_ref(x, raw):
    out = jax.nn.relu(_bn_ref(_conv_ref(x, raw['conv1_w'], raw['stride'], 1),
                              raw['bn1']))
    out = _bn_ref(_conv_ref(out, raw['conv2_w'], 1, 1), raw['bn2'])
    if 'sc_w' in raw:
        sc = _bn_ref(_conv_ref(x, raw['sc_w'], raw['stride'], 0), raw['sc_bn'])
    else:
        sc = x
    return jax.nn.relu(out + sc)


# ----------------------------------------------------------------------------
# Synthetic parameter init
# ----------------------------------------------------------------------------
def init_bn(key, c):
    k1, k2, k3, k4 = jax.random.split(key, 4)
    return dict(gamma=jax.random.uniform(k1, (c,), jnp.float32, 0.5, 1.5),
                beta=jax.random.normal(k2, (c,), jnp.float32) * 0.2,
                mean=jax.random.normal(k3, (c,), jnp.float32) * 0.2,
                var=jax.random.uniform(k4, (c,), jnp.float32, 0.5, 1.5))


def init_basic_block(key, in_planes, planes, stride):
    ks = jax.random.split(key, 6)
    raw = {
        'stride': stride,
        'conv1_w': jax.random.normal(ks[0], (planes, in_planes, 3, 3),
                                     jnp.float32) / np.sqrt(in_planes * 9),
        'bn1': init_bn(ks[1], planes),
        'conv2_w': jax.random.normal(ks[2], (planes, planes, 3, 3),
                                     jnp.float32) / np.sqrt(planes * 9),
        'bn2': init_bn(ks[3], planes),
    }
    if stride != 1 or in_planes != planes:
        raw['sc_w'] = jax.random.normal(ks[4], (planes, in_planes, 1, 1),
                                        jnp.float32) / np.sqrt(in_planes)
        raw['sc_bn'] = init_bn(ks[5], planes)
    return raw


if __name__ == "__main__":
    key = jax.random.PRNGKey(0)
    k1, k2, kx = jax.random.split(key, 3)

    # Small shapes consistent with the module:
    #   block1: projection shortcut (stride=2, 32 -> 64 channels)
    #   block2: identity shortcut   (stride=1, 64 -> 64 channels)
    N, C, H, W = 2, 32, 16, 16
    raw1 = init_basic_block(k1, C, 64, stride=2)
    raw2 = init_basic_block(k2, 64, 64, stride=1)
    bp1 = prepare_basic_block(raw1)
    bp2 = prepare_basic_block(raw2)

    x = jax.random.normal(kx, (N, C, H, W), jnp.float32)

    @jax.jit
    def forward(xin):
        y1 = basic_block_forward(xin, bp1)
        y2 = basic_block_forward(y1, bp2)
        return y1, y2

    y1, y2 = jax.block_until_ready(forward(x))
    assert y1.shape == (N, 64, 8, 8), y1.shape
    assert y2.shape == (N, 64, 8, 8), y2.shape
    assert bool(jnp.all(jnp.isfinite(y1))) and bool(jnp.all(jnp.isfinite(y2)))

    # Correctness vs plain-JAX f32 reference (bf16 MXU inputs -> loose tol)
    r1 = basic_block_ref(x, raw1)
    r2 = basic_block_ref(r1, raw2)
    err1 = float(jnp.max(jnp.abs(y1 - r1)))
    err2 = float(jnp.max(jnp.abs(y2 - r2)))
    assert err1 < 0.15, f"block1 max abs err {err1}"
    assert err2 < 0.15, f"block2 max abs err {err2}"

    print("KERNEL_OK")
</pallas_src>

<mosaic_0001>
module attributes {stable_mosaic.version = 11 : i64} {
  func.func @_mm_kernel(%arg0: i32, %arg1: i32, %arg2: i32, %arg3: memref<64x384xbf16, #tpu.memory_space<vmem>>, %arg4: memref<384x128xbf16, #tpu.memory_space<vmem>>, %arg5: memref<1x128xf32, #tpu.memory_space<vmem>>, %arg6: memref<64x128xf32, #tpu.memory_space<vmem>>) attributes {dimension_semantics = [#tpu.dimension_semantics<parallel>, #tpu.dimension_semantics<parallel>, #tpu.dimension_semantics<arbitrary>], iteration_bounds = array<i64: 2, 1, 1>, scalar_prefetch = 0 : i64, scratch_operands = 0 : i64, tpu.core_type = #tpu.core_type<tc>, window_params = [{transform_indices = @transform_0, window_bounds = array<i64: 64, 384>}, {transform_indices = @transform_1, window_bounds = array<i64: 384, 128>}, {transform_indices = @transform_2, window_bounds = array<i64: 1, 128>}, {transform_indices = @transform_3, window_bounds = array<i64: 64, 128>}]} {
    %c0 = arith.constant 0 : index
    %c0_0 = arith.constant 0 : index
    %0 = vector.load %arg3[%c0, %c0_0] : memref<64x384xbf16, #tpu.memory_space<vmem>>, vector<64x384xbf16>
    %c0_1 = arith.constant 0 : index
    %c0_2 = arith.constant 0 : index
    %1 = vector.load %arg4[%c0_1, %c0_2] : memref<384x128xbf16, #tpu.memory_space<vmem>>, vector<384x128xbf16>
    %cst = arith.constant dense<0.000000e+00> : vector<64x128xf32>
    %2 = tpu.matmul %0, %1, %cst {dimension_numbers = #tpu.dot_dimension_numbers<[1], [0], [0], [1], [0, 0, 1, 1], [], []>} : vector<64x384xbf16>, vector<384x128xbf16>, vector<64x128xf32> -> vector<64x128xf32>
    %c0_3 = arith.constant 0 : index
    %c0_4 = arith.constant 0 : index
    %3 = vector.load %arg5[%c0_3, %c0_4] : memref<1x128xf32, #tpu.memory_space<vmem>>, vector<1x128xf32>
    %4 = vector.broadcast %3 : vector<1x128xf32> to vector<64x128xf32>
    %5 = arith.addf %2, %4 : vector<64x128xf32>
    %cst_5 = arith.constant 0.000000e+00 : f32
    %6 = vector.broadcast %cst_5 : f32 to vector<64x128xf32>
    %7 = arith.maximumf %5, %6 : vector<64x128xf32>
    %c0_6 = arith.constant 0 : index
    %c0_7 = arith.constant 0 : index
    %8 = vector.load %arg6[%c0_6, %c0_7] : memref<64x128xf32, #tpu.memory_space<vmem>>, vector<64x128xf32>
    tpu.vector_store %arg6[%c0_6, %c0_7], %7 {strides = array<i32>} : memref<64x128xf32, #tpu.memory_space<vmem>>, vector<64x128xf32>,
    return
  }
  func.func @transform_0(%arg0: i32, %arg1: i32, %arg2: i32) -> (i32, i32) {
    %c0_i32 = arith.constant 0 : i32
    return %arg0, %arg2 : i32, i32
  }
  func.func @transform_1(%arg0: i32, %arg1: i32, %arg2: i32) -> (i32, i32) {
    %c0_i32 = arith.constant 0 : i32
    return %arg2, %arg1 : i32, i32
  }
  func.func @transform_2(%arg0: i32, %arg1: i32, %arg2: i32) -> (i32, i32) {
    %c0_i32 = arith.constant 0 : i32
    %c0_i32_0 = arith.constant 0 : i32
    return %c0_i32, %arg1 : i32, i32
  }
  func.func @transform_3(%arg0: i32, %arg1: i32, %arg2: i32) -> (i32, i32) {
    %c0_i32 = arith.constant 0 : i32
    return %arg0, %arg1 : i32, i32
  }
}

module attributes {stable_mosaic.version = 11 : i64} {
  func.func @_mm_kernel(%arg0: i32, %arg1: i32, %arg2: i32, %arg3: memref<64x640xbf16, #tpu.memory_space<vmem>>, %arg4: memref<640x128xbf16, #tpu.memory_space<vmem>>, %arg5: memref<1x128xf32, #tpu.memory_space<vmem>>, %arg6: memref<64x128xf32, #tpu.memory_space<vmem>>) attributes {dimension_semantics = [#tpu.dimension_semantics<parallel>, #tpu.dimension_semantics<parallel>, #tpu.dimension_semantics<arbitrary>], iteration_bounds = array<i64: 2, 1, 1>, scalar_prefetch = 0 : i64, scratch_operands = 0 : i64, tpu.core_type = #tpu.core_type<tc>, window_params = [{transform_indices = @transform_0, window_bounds = array<i64: 64, 640>}, {transform_indices = @transform_1, window_bounds = array<i64: 640, 128>}, {transform_indices = @transform_2, window_bounds = array<i64: 1, 128>}, {transform_indices = @transform_3, window_bounds = array<i64: 64, 128>}]} {
    %c0 = arith.constant 0 : index
    %c0_0 = arith.constant 0 : index
    %0 = vector.load %arg3[%c0, %c0_0] : memref<64x640xbf16, #tpu.memory_space<vmem>>, vector<64x640xbf16>
    %c0_1 = arith.constant 0 : index
    %c0_2 = arith.constant 0 : index
    %1 = vector.load %arg4[%c0_1, %c0_2] : memref<640x128xbf16, #tpu.memory_space<vmem>>, vector<640x128xbf16>
    %cst = arith.constant dense<0.000000e+00> : vector<64x128xf32>
    %2 = tpu.matmul %0, %1, %cst {dimension_numbers = #tpu.dot_dimension_numbers<[1], [0], [0], [1], [0, 0, 1, 1], [], []>} : vector<64x640xbf16>, vector<640x128xbf16>, vector<64x128xf32> -> vector<64x128xf32>
    %c0_3 = arith.constant 0 : index
    %c0_4 = arith.constant 0 : index
    %3 = vector.load %arg5[%c0_3, %c0_4] : memref<1x128xf32, #tpu.memory_space<vmem>>, vector<1x128xf32>
    %4 = vector.broadcast %3 : vector<1x128xf32> to vector<64x128xf32>
    %5 = arith.addf %2, %4 : vector<64x128xf32>
    %cst_5 = arith.constant 0.000000e+00 : f32
    %6 = vector.broadcast %cst_5 : f32 to vector<64x128xf32>
    %7 = arith.maximumf %5, %6 : vector<64x128xf32>
    %c0_6 = arith.constant 0 : index
    %c0_7 = arith.constant 0 : index
    %8 = vector.load %arg6[%c0_6, %c0_7] : memref<64x128xf32, #tpu.memory_space<vmem>>, vector<64x128xf32>
    tpu.vector_store %arg6[%c0_6, %c0_7], %7 {strides = array<i32>} : memref<64x128xf32, #tpu.memory_space<vmem>>, vector<64x128xf32>,
    return
  }
  func.func @transform_0(%arg0: i32, %arg1: i32, %arg2: i32) -> (i32, i32) {
    %c0_i32 = arith.constant 0 : i32
    return %arg0, %arg2 : i32, i32
  }
  func.func @transform_1(%arg0: i32, %arg1: i32, %arg2: i32) -> (i32, i32) {
    %c0_i32 = arith.constant 0 : i32
    return %arg2, %arg1 : i32, i32
  }
  func.func @transform_2(%arg0: i32, %arg1: i32, %arg2: i32) -> (i32, i32) {
    %c0_i32 = arith.constant 0 : i32
    %c0_i32_0 = arith.constant 0 : i32
    return %c0_i32, %arg1 : i32, i32
  }
  func.func @transform_3(%arg0: i32, %arg1: i32, %arg2: i32) -> (i32, i32) {
    %c0_i32 = arith.constant 0 : i32
    return %arg0, %arg1 : i32, i32
  }
}

module attributes {stable_mosaic.version = 11 : i64} {
  func.func @_mm_kernel(%arg0: i32, %arg1: i32, %arg2: i32, %arg3: memref<64x640xbf16, #tpu.memory_space<vmem>>, %arg4: memref<640x128xbf16, #tpu.memory_space<vmem>>, %arg5: memref<1x128xf32, #tpu.memory_space<vmem>>, %arg6: memref<64x128xf32, #tpu.memory_space<vmem>>, %arg7: memref<64x128xf32, #tpu.memory_space<vmem>>) attributes {dimension_semantics = [#tpu.dimension_semantics<parallel>, #tpu.dimension_semantics<parallel>, #tpu.dimension_semantics<arbitrary>], iteration_bounds = array<i64: 2, 1, 1>, scalar_prefetch = 0 : i64, scratch_operands = 0 : i64, tpu.core_type = #tpu.core_type<tc>, window_params = [{transform_indices = @transform_0, window_bounds = array<i64: 64, 640>}, {transform_indices = @transform_1, window_bounds = array<i64: 640, 128>}, {transform_indices = @transform_2, window_bounds = array<i64: 1, 128>}, {transform_indices = @transform_3, window_bounds = array<i64: 64, 128>}, {transform_indices = @transform_4, window_bounds = array<i64: 64, 128>}]} {
    %c0 = arith.constant 0 : index
    %c0_0 = arith.constant 0 : index
    %0 = vector.load %arg3[%c0, %c0_0] : memref<64x640xbf16, #tpu.memory_space<vmem>>, vector<64x640xbf16>
    %c0_1 = arith.constant 0 : index
    %c0_2 = arith.constant 0 : index
    %1 = vector.load %arg4[%c0_1, %c0_2] : memref<640x128xbf16, #tpu.memory_space<vmem>>, vector<640x128xbf16>
    %cst = arith.constant dense<0.000000e+00> : vector<64x128xf32>
    %2 = tpu.matmul %0, %1, %cst {dimension_numbers = #tpu.dot_dimension_numbers<[1], [0], [0], [1], [0, 0, 1, 1], [], []>} : vector<64x640xbf16>, vector<640x128xbf16>, vector<64x128xf32> -> vector<64x128xf32>
    %c0_3 = arith.constant 0 : index
    %c0_4 = arith.constant 0 : index
    %3 = vector.load %arg5[%c0_3, %c0_4] : memref<1x128xf32, #tpu.memory_space<vmem>>, vector<1x128xf32>
    %4 = vector.broadcast %3 : vector<1x128xf32> to vector<64x128xf32>
    %5 = arith.addf %2, %4 : vector<64x128xf32>
    %c0_5 = arith.constant 0 : index
    %c0_6 = arith.constant 0 : index
    %6 = vector.load %arg6[%c0_5, %c0_6] : memref<64x128xf32, #tpu.memory_space<vmem>>, vector<64x128xf32>
    %7 = arith.addf %5, %6 : vector<64x128xf32>
    %cst_7 = arith.constant 0.000000e+00 : f32
    %8 = vector.broadcast %cst_7 : f32 to vector<64x128xf32>
    %9 = arith.maximumf %7, %8 : vector<64x128xf32>
    %c0_8 = arith.constant 0 : index
    %c0_9 = arith.constant 0 : index
    %10 = vector.load %arg7[%c0_8, %c0_9] : memref<64x128xf32, #tpu.memory_space<vmem>>, vector<64x128xf32>
    tpu.vector_store %arg7[%c0_8, %c0_9], %9 {strides = array<i32>} : memref<64x128xf32, #tpu.memory_space<vmem>>, vector<64x128xf32>,
    return
  }
  func.func @transform_0(%arg0: i32, %arg1: i32, %arg2: i32) -> (i32, i32) {
    %c0_i32 = arith.constant 0 : i32
    return %arg0, %arg2 : i32, i32
  }
  func.func @transform_1(%arg0: i32, %arg1: i32, %arg2: i32) -> (i32, i32) {
    %c0_i32 = arith.constant 0 : i32
    return %arg2, %arg1 : i32, i32
  }
  func.func @transform_2(%arg0: i32, %arg1: i32, %arg2: i32) -> (i32, i32) {
    %c0_i32 = arith.constant 0 : i32
    %c0_i32_0 = arith.constant 0 : i32
    return %c0_i32, %arg1 : i32, i32
  }
  func.func @transform_3(%arg0: i32, %arg1: i32, %arg2: i32) -> (i32, i32) {
    %c0_i32 = arith.constant 0 : i32
    return %arg0, %arg1 : i32, i32
  }
  func.func @transform_4(%arg0: i32, %arg1: i32, %arg2: i32) -> (i32, i32) {
    %c0_i32 = arith.constant 0 : i32
    return %arg0, %arg1 : i32, i32
  }
}

</mosaic_0001>

<bundles_post_ra>
// kernel: forward.4
= control target key start
LH: loop header
LB: loop body
LE: loop exit
PB: predicated region body
PF: predicated region fallthrough
CT: control target
= control target key end

     0   :  { %s1042_s12 = smov 0   ;;  %s1044_s13 = smov 0   ;;  %s1181_s0 = inlined_call_operand.vmem [shape: bf16[128,384], index: 0, kind: input, shape index: {}]   ;;  %s1182_s1 = inlined_call_operand.vmem [shape: bf16[384,128], index: 1, kind: input, shape index: {}]   ;;  %s1183_s2 = inlined_call_operand.vmem [shape: f32[1,128], index: 2, kind: input, shape index: {}]   ;;  %s1184_s3 = inlined_call_operand.vmem [shape: f32[128,128], index: 3, kind: output, shape index: {}]  }
   0x1   :  { %s1046_s14 = smov 0  }
   0x2 LB: > { %s32_s15 = sadd.s32 1, %s1016_s13  ;;  %p813_p0 = scmp.ge.s32.totalorder %s1020_s14, 1  ;;  %s1020_s14 = sphi %s1046_s14, %s13_s14   ;;  %s1016_s13 = sphi %s1044_s13, %s1186_s13   ;;  %s1012_s12 = sphi %s1042_s12, %s1185_s12  }
   0x3   : > { %p34_p1 = scmp.ge.s32.totalorder %s32_s15, 2  ;;  %p191_p2 = scmp.lt.s32.totalorder %s1020_s14, 3 }
   0x5   : > { %s1188_s15 = smov (%p34_p1, %s32_s15), 0  ;;  %p192_p3 = pnand %p813_p0, %p191_p2 }
   0x6   : > { %v958_v0 = vld [vmem:[%s1182_s1 + $0x40] sm:$0xff] (!%p192_p3)   ;;  %v960_v2 = vld [vmem:[%s1182_s1 + $0x48] sm:$0xff] (!%p192_p3)   ;;  %v963_v5 = vld [vmem:[%s1182_s1 + $0x50] sm:$0xff] (!%p192_p3)   ;;  %s814_s30 = sshll.u32 (!%p192_p3), %s1012_s12, 3 }
   0x7   : > { %195 = sbr.rel (%p192_p3) target bundleno = 287 (0x11f), region = 32  ;;  %v959_v1 = vld [vmem:[%s1182_s1] sm:$0xff] (!%p192_p3)   ;;  %857 = vmatprep.subr.bf16.mxu0 (!%p192_p3), %v958_v0  ;;  %v962_v4 = vld [vmem:[%s1182_s1 + $0x8] sm:$0xff] (!%p192_p3)   ;;  %v965_v7 = vld [vmem:[%s1182_s1 + $0x10] sm:$0xff] (!%p192_p3)   ;;  %p236_p4 = scmp.lt.s32.totalorder (!%p192_p3), %s814_s30, 15 }
   0x8   : > { %858 = vmatpush3.bf16.msra.mxu0 (!%p192_p3), %v959_v1  ;;  %v961_v3 = vld [vmem:[%s1182_s1 + $0x80] sm:$0xff] (!%p192_p3)   ;;  %v964_v6 = vld [vmem:[%s1182_s1 + $0x88] sm:$0xff] (!%p192_p3)   ;;  %v966_v8 = vld [vmem:[%s1182_s1 + $0x58] sm:$0xff] (!%p192_p3)  }
   0x9   : > { %859 = vmatprep.subr.bf16.mxu0 (!%p192_p3), %v960_v2  ;;  %909 = vmatprep.subr.bf16.mxu1 (!%p192_p3), %v961_v3  ;;  %v967_v9 = vld [vmem:[%s1182_s1 + $0x90] sm:$0xff] (!%p192_p3)   ;;  %v968_v10 = vld [vmem:[%s1182_s1 + $0x18] sm:$0xff] (!%p192_p3)   ;;  %v969_v11 = vld [vmem:[%s1182_s1 + $0x60] sm:$0xff] (!%p192_p3)  }
   0xa   : > { %910 = vmatpush3.bf16.msra.mxu1 (!%p192_p3), %v961_v3  ;;  %v970_v12 = vld [vmem:[%s1182_s1 + $0x98] sm:$0xff] (!%p192_p3)   ;;  %v971_v13 = vld [vmem:[%s1182_s1 + $0x20] sm:$0xff] (!%p192_p3)   ;;  %v972_v15 = vld [vmem:[%s1182_s1 + $0x68] sm:$0xff] (!%p192_p3)  }
   0xb   : > { %911 = vmatprep.subr.bf16.mxu1 (!%p192_p3), %v964_v6  ;;  %v973_v14 = vld [vmem:[%s1182_s1 + $0xa0] sm:$0xff] (!%p192_p3)   ;;  %v974_v16 = vld [vmem:[%s1182_s1 + $0x28] sm:$0xff] (!%p192_p3)   ;;  %v975_v18 = vld [vmem:[%s1182_s1 + $0x70] sm:$0xff] (!%p192_p3)  }
   0xc   : > { %860 = vmatpush3.bf16.msra.mxu0 (!%p192_p3), %v962_v4  ;;  %v976_v17 = vld [vmem:[%s1182_s1 + $0xa8] sm:$0xff] (!%p192_p3)   ;;  %v977_v19 = vld [vmem:[%s1182_s1 + $0x30] sm:$0xff] (!%p192_p3)   ;;  %v978_v20 = vld [vmem:[%s1182_s1 + $0x78] sm:$0xff] (!%p192_p3)  }
   0xd   : > { %861 = vmatprep.subr.bf16.mxu0 (!%p192_p3), %v963_v5  ;;  %v979_v21 = vld [vmem:[%s1182_s1 + $0xb0] sm:$0xff] (!%p192_p3)   ;;  %v980_v23 = vld [vmem:[%s1182_s1 + $0x38] sm:$0xff] (!%p192_p3)   ;;  %v818_v38 = vld [vmem:[%s1183_s2] ss:$0 sm:$0xff] (!%p192_p3) }
   0xe   : > { %912 = vmatpush3.bf16.msra.mxu1 %v964_v6  ;;  %s1190_s30 = smov (!%p236_p4, %s814_s30), 15  ;;  %v984_v25 = vld [vmem:[%s1182_s1 + $0xb8] sm:$0xff]  }
   0xf   : > { %913 = vmatprep.subr.bf16.mxu1 %v967_v9  ;;  %s933_s25 = smul.u32 12, %s1190_s30  ;;  %s817_s24 = sshll.u32 %s1190_s30, 3 }
  0x10   : > { %862 = vmatpush3.bf16.msra.mxu0 %v965_v7  ;;  %s1162_s27 = scalar_lea.vmem %s1184_s3, %s817_s24 }
  0x11   : > { %863 = vmatprep.subr.bf16.mxu0 %v966_v8  ;;  %s1129_s10 = scalar_lea.vmem %s1181_s0, %s933_s25 }
  0x12   : > { %914 = vmatpush3.bf16.msra.mxu1 %v967_v9  ;;  %v983_v22 = vld [vmem:[%s1129_s10 + $0x4] ss:$12 sps:$4 sm:$0xff]   ;;  %v985_v24 = vld [vmem:[%s1129_s10 + $0x8] ss:$12 sps:$4 sm:$0xff]   ;;  %v981_v26 = vld [vmem:[%s1129_s10] ss:$12 sps:$4 sm:$0xff]  }
  0x13   : > { %915 = vmatprep.subr.bf16.mxu1 %v970_v12  ;;  %579 = vmatprep.mubr.bf16.mxu0 %v983_v22  ;;  %v987_v27 = vld [vmem:[%s1129_s10 + $0x1c] ss:$12 sps:$4 sm:$0xff]   ;;  %v986_v28 = vld [vmem:[%s1129_s10 + $0x20] ss:$12 sps:$4 sm:$0xff]   ;;  %v993_v29 = vld [vmem:[%s1129_s10 + $0x38] ss:$12 sps:$4 sm:$0xff]  }
  0x14   : > { %864 = vmatpush3.bf16.msra.mxu0 %v968_v10  ;;  %925 = vmatprep.mubr.bf16.mxu1 %v985_v24  ;;  %v989_v30 = vld [vmem:[%s1129_s10 + $0x18] ss:$12 sps:$4 sm:$0xff]   ;;  %v990_v31 = vld [vmem:[%s1129_s10 + $0x34] ss:$12 sps:$4 sm:$0xff]   ;;  %v994_v32 = vld [vmem:[%s1129_s10 + $0x50] ss:$12 sps:$4 sm:$0xff]  }
  0x15   : > { %865 = vmatprep.subr.bf16.mxu0 %v969_v11  ;;  %v992_v33 = vld [vmem:[%s1129_s10 + $0x30] ss:$12 sps:$4 sm:$0xff]   ;;  %v995_v34 = vld [vmem:[%s1129_s10 + $0x4c] ss:$12 sps:$4 sm:$0xff]   ;;  %v997_v35 = vld [vmem:[%s1129_s10 + $0x48] ss:$12 sps:$4 sm:$0xff]  }
  0x16   : > { %916 = vmatpush3.bf16.msra.mxu1 %v970_v12 }
  0x17   : > { %917 = vmatprep.subr.bf16.mxu1 %v973_v14 }
  0x18   : > { %866 = vmatpush3.bf16.msra.mxu0 %v971_v13 }
  0x19   : > { %867 = vmatprep.subr.bf16.mxu0 %v972_v15 }
  0x1a   : > { %918 = vmatpush3.bf16.msra.mxu1 %v973_v14 }
  0x1b   : > { %919 = vmatprep.subr.bf16.mxu1 %v976_v17 }
  0x1c   : > { %868 = vmatpush3.bf16.msra.mxu0 %v974_v16 }
  0x1d   : > { %869 = vmatprep.subr.bf16.mxu0 %v975_v18 }
  0x1e   : > { %920 = vmatpush3.bf16.msra.mxu1 %v976_v17 }
  0x1f   : > { %921 = vmatprep.subr.bf16.mxu1 %v979_v21 }
  0x20   : > { %870 = vmatpush3.bf16.msra.mxu0 %v977_v19 }
  0x21   : > { %871 = vmatprep.subr.bf16.mxu0 %v978_v20 }
  0x22   : > { %922 = vmatpush3.bf16.msra.mxu1 %v979_v21 }
  0x23   : > { %923 = vmatprep.subr.bf16.mxu1 %v984_v25 }
  0x24   : > { %872 = vmatpush3.bf16.msra.mxu0 %v980_v23 }
  0x26   : > { %924 = vmatpush3.bf16.msra.mxu1 %v984_v25 }
  0x27   : > { %580 = vmatmul.mubr.bf16.vlgmr.msra.gmra.mrb[0].mxu0 %v981_v26 }
  0x28   : > { %587 = vmatprep.mubr.bf16.mxu0 %v987_v27 }
  0x29   : > { %926 = vmatmul.mubr.bf16.vlgmr.msra.gmra.mrb[0].mxu1 %v986_v28 }
  0x2a   : > { %929 = vmatprep.mubr.bf16.mxu1 %v993_v29 }
  0x2f   : > { %588 = vmatmul.mubr.bf16.gmra.mrb[4].mxu0 %v989_v30 }
  0x30   : > { %595 = vmatprep.mubr.bf16.mxu0 %v990_v31 }
  0x31   : > { %930 = vmatmul.mubr.bf16.gmra.mrb[4].mxu1 %v994_v32 }
  0x37   : > { %596 = vmatmul.mubr.bf16.gmra.mrb[8].mxu0 %v992_v33 }
  0x38   : > { %603 = vmatprep.mubr.bf16.mxu0 %v995_v34 }
  0x3f   : > { %604 = vmatmul.mubr.bf16.gmra.mrb[12].mxu0 %v997_v35 }
  0xfa   : > { %v873_v36 = vpop.f32.mrb[0].mxu0 }
  0xfb   : > { %v874_v37 = vpop.f32.mrb[1].mxu0 }
  0xfc   : > { %v875_v39 = vadd.f32 %v874_v37, %v873_v36  ;;  %v876_v40 = vpop.f32.mrb[2].mxu0  ;;  %v927_v42 = vpop.f32.mrb[0].mxu1 }
  0xfd   : > { %v877_v41 = vpop.f32.mrb[3].mxu0  ;;  %v646_v45 = vpop.f32.mrb[1].mxu1 }
  0xfe   : > { %v878_v43 = vadd.f32 %v877_v41, %v876_v40  ;;  %v582_v44 = vadd.f32 %v875_v39, %v818_v38  ;;  %v928_v46 = vpop.f32.mrb[2].mxu1 }
  0xff   : > { %v649_v49 = vpop.f32.mrb[3].mxu1 }
 0x100   : > { %v647_v47 = vadd.f32 %v646_v45, %v582_v44  ;;  %v585_v48 = vadd.f32 %v878_v43, %v818_v38 }
 0x102   : > { %v677_v50 = vmax.f32 %v647_v47, 0.0  ;;  %v650_v51 = vadd.f32 %v649_v49, %v585_v48  ;;  %v879_v52 = vpop.f32.mrb[4].mxu0 }
 0x103   : > { %v880_v53 = vpop.f32.mrb[5].mxu0 }
 0x104   : > { %685 = vst [vmem:[%s1162_s27] sm:$0xff] %v677_v50  ;;  %v678_v54 = vmax.f32 %v650_v51, 0.0  ;;  %v881_v55 = vadd.f32 %v880_v53, %v879_v52  ;;  %v882_v56 = vpop.f32.mrb[6].mxu0  ;;  %v931_v58 = vpop.f32.mrb[4].mxu1 }
 0x105   : > { %v883_v57 = vpop.f32.mrb[7].mxu0  ;;  %v662_v61 = vpop.f32.mrb[5].mxu1 }
 0x106   : > { %686 = vst [vmem:[%s1162_s27 + $0x8] sm:$0xff] %v678_v54  ;;  %v590_v59 = vadd.f32 %v881_v55, %v818_v38  ;;  %v884_v60 = vadd.f32 %v883_v57, %v882_v56  ;;  %v932_v62 = vpop.f32.mrb[6].mxu1 }
 0x107   : > { %v665_v1 = vpop.f32.mrb[7].mxu1 }
 0x108   : > { %v655_v63 = vadd.f32 %v927_v42, %v590_v59  ;;  %v593_v0 = vadd.f32 %v884_v60, %v818_v38 }
 0x10a   : > { %v679_v2 = vmax.f32 %v655_v63, 0.0  ;;  %v658_v3 = vadd.f32 %v928_v46, %v593_v0  ;;  %v885_v4 = vpop.f32.mrb[8].mxu0 }
 0x10b   : > { %v886_v5 = vpop.f32.mrb[9].mxu0 }
 0x10c   : > { %687 = vst [vmem:[%s1162_s27 + $0x10] sm:$0xff] %v679_v2  ;;  %v680_v6 = vmax.f32 %v658_v3, 0.0  ;;  %v887_v7 = vadd.f32 %v886_v5, %v885_v4  ;;  %v888_v8 = vpop.f32.mrb[10].mxu0 }
 0x10d   : > { %v889_v9 = vpop.f32.mrb[11].mxu0 }
 0x10e   : > { %688 = vst [vmem:[%s1162_s27 + $0x18] sm:$0xff] %v680_v6  ;;  %v890_v10 = vadd.f32 %v889_v9, %v888_v8  ;;  %v598_v11 = vadd.f32 %v887_v7, %v818_v38 }
 0x110   : > { %v663_v12 = vadd.f32 %v662_v61, %v598_v11  ;;  %v601_v13 = vadd.f32 %v890_v10, %v818_v38 }
 0x112   : > { %v681_v14 = vmax.f32 %v663_v12, 0.0  ;;  %v666_v15 = vadd.f32 %v665_v1, %v601_v13  ;;  %v891_v16 = vpop.f32.mrb[12].mxu0 }
 0x113   : > { %v892_v17 = vpop.f32.mrb[13].mxu0 }
 0x114   : > { %689 = vst [vmem:[%s1162_s27 + $0x20] sm:$0xff] %v681_v14  ;;  %v682_v18 = vmax.f32 %v666_v15, 0.0  ;;  %v893_v19 = vadd.f32 %v892_v17, %v891_v16  ;;  %v894_v20 = vpop.f32.mrb[14].mxu0 }
 0x115   : > { %v895_v21 = vpop.f32.mrb[15].mxu0 }
 0x116   : > { %690 = vst [vmem:[%s1162_s27 + $0x28] sm:$0xff] %v682_v18  ;;  %v606_v22 = vadd.f32 %v893_v19, %v818_v38  ;;  %v896_v23 = vadd.f32 %v895_v21, %v894_v20 }
 0x118   : > { %v671_v24 = vadd.f32 %v931_v58, %v606_v22  ;;  %v609_v25 = vadd.f32 %v896_v23, %v818_v38 }
 0x11a   : > { %v683_v26 = vmax.f32 %v671_v24, 0.0  ;;  %v674_v27 = vadd.f32 %v932_v62, %v609_v25 }
 0x11c   : > { %691 = vst [vmem:[%s1162_s27 + $0x30] sm:$0xff] %v683_v26  ;;  %v684_v28 = vmax.f32 %v674_v27, 0.0 }
 0x11e   : > { %692 = vst [vmem:[%s1162_s27 + $0x38] sm:$0xff] %v684_v28 }
 0x11f PF: > { %s13_s14 = sadd.s32 1, %s1020_s14   ;;  %s1185_s12 = smov %s1016_s13 }
 0x120   : > { %p10_p5 = scmp.ge.s32.totalorder %s13_s14, 4   ;;  %s1186_s13 = smov %s1188_s15 }
 0x122   :  { %12 = sbr.rel (!%p10_p5) target bundleno = 2 (0x2), region = 68 }

// kernel: forward.5
= control target key start
LH: loop header
LB: loop body
LE: loop exit
PB: predicated region body
PF: predicated region fallthrough
CT: control target
= control target key end

     0   :  { %s1391_s12 = smov 0   ;;  %s1393_s13 = smov 0   ;;  %s1579_s0 = inlined_call_operand.vmem [shape: bf16[128,640], index: 0, kind: input, shape index: {}]   ;;  %s1580_s1 = inlined_call_operand.vmem [shape: bf16[640,128], index: 1, kind: input, shape index: {}]   ;;  %s1581_s2 = inlined_call_operand.vmem [shape: f32[1,128], index: 2, kind: input, shape index: {}]   ;;  %s1582_s3 = inlined_call_operand.vmem [shape: f32[128,128], index: 3, kind: output, shape index: {}]  }
   0x1   :  { %s1395_s14 = smov 0  }
   0x2 LB: > { %s32_s15 = sadd.s32 1, %s1365_s13  ;;  %p1054_p0 = scmp.ge.s32.totalorder %s1369_s14, 1  ;;  %s1369_s14 = sphi %s1395_s14, %s13_s14   ;;  %s1365_s13 = sphi %s1393_s13, %s1584_s13   ;;  %s1361_s12 = sphi %s1391_s12, %s1583_s12  }
   0x3   : > { %p34_p1 = scmp.ge.s32.totalorder %s32_s15, 2  ;;  %p191_p2 = scmp.lt.s32.totalorder %s1369_s14, 3 }
   0x5   : > { %s1586_s15 = smov (%p34_p1, %s32_s15), 0  ;;  %p192_p3 = pnand %p1054_p0, %p191_p2 }
   0x6   : > { %v1279_v0 = vld [vmem:[%s1580_s1 + $0x40] sm:$0xff] (!%p192_p3)   ;;  %v1283_v4 = vld [vmem:[%s1580_s1 + $0x48] sm:$0xff] (!%p192_p3)   ;;  %v1287_v8 = vld [vmem:[%s1580_s1 + $0x50] sm:$0xff] (!%p192_p3)   ;;  %s1055_s23 = sshll.u32 (!%p192_p3), %s1361_s12, 3 }
   0x7   : > { %195 = sbr.rel (%p192_p3) target bundleno = 294 (0x126), region = 32  ;;  %v1280_v1 = vld [vmem:[%s1580_s1 + $0xc0] sm:$0xff] (!%p192_p3)   ;;  %1122 = vmatprep.subr.bf16.mxu0 (!%p192_p3), %v1279_v0  ;;  %v1284_v5 = vld [vmem:[%s1580_s1 + $0xc8] sm:$0xff] (!%p192_p3)   ;;  %v1288_v9 = vld [vmem:[%s1580_s1 + $0xd0] sm:$0xff] (!%p192_p3)   ;;  %p236_p4 = scmp.lt.s32.totalorder (!%p192_p3), %s1055_s23, 15 }
   0x8   : > { %v1281_v2 = vld [vmem:[%s1580_s1] sm:$0xff] (!%p192_p3)   ;;  %1162 = vmatprep.subr.bf16.mxu1 (!%p192_p3), %v1280_v1  ;;  %v1285_v6 = vld [vmem:[%s1580_s1 + $0x8] sm:$0xff] (!%p192_p3)   ;;  %v1289_v10 = vld [vmem:[%s1580_s1 + $0x10] sm:$0xff] (!%p192_p3)  }
   0x9   : > { %v1282_v3 = vld [vmem:[%s1580_s1 + $0x80] sm:$0xff] (!%p192_p3)   ;;  %1123 = vmatpush3.bf16.msra.mxu0 (!%p192_p3), %v1281_v2  ;;  %v1286_v7 = vld [vmem:[%s1580_s1 + $0x88] sm:$0xff] (!%p192_p3)   ;;  %v1290_v11 = vld [vmem:[%s1580_s1 + $0x90] sm:$0xff] (!%p192_p3)  }
   0xa   : > { %1163 = vmatpush3.bf16.msra.mxu1 (!%p192_p3), %v1282_v3  ;;  %1124 = vmatprep.subr.bf16.mxu0 (!%p192_p3), %v1283_v4  ;;  %v1291_v12 = vld [vmem:[%s1580_s1 + $0x58] sm:$0xff] (!%p192_p3)   ;;  %v1295_v16 = vld [vmem:[%s1580_s1 + $0x60] sm:$0xff] (!%p192_p3)   ;;  %v1299_v20 = vld [vmem:[%s1580_s1 + $0x68] sm:$0xff] (!%p192_p3)  }
   0xb   : > { %1164 = vmatprep.subr.bf16.mxu1 (!%p192_p3), %v1284_v5  ;;  %v1292_v13 = vld [vmem:[%s1580_s1 + $0xd8] sm:$0xff] (!%p192_p3)   ;;  %v1296_v17 = vld [vmem:[%s1580_s1 + $0xe0] sm:$0xff] (!%p192_p3)   ;;  %v1300_v21 = vld [vmem:[%s1580_s1 + $0xe8] sm:$0xff] (!%p192_p3)  }
   0xc   : > { %v1293_v14 = vld [vmem:[%s1580_s1 + $0x18] sm:$0xff] (!%p192_p3)   ;;  %v1297_v18 = vld [vmem:[%s1580_s1 + $0x20] sm:$0xff] (!%p192_p3)   ;;  %v1301_v22 = vld [vmem:[%s1580_s1 + $0x28] sm:$0xff] (!%p192_p3)  }
   0xd   : > { %1125 = vmatpush3.bf16.msra.mxu0 (!%p192_p3), %v1285_v6  ;;  %v1294_v15 = vld [vmem:[%s1580_s1 + $0x98] sm:$0xff] (!%p192_p3)   ;;  %v1298_v19 = vld [vmem:[%s1580_s1 + $0xa0] sm:$0xff] (!%p192_p3)   ;;  %v1302_v23 = vld [vmem:[%s1580_s1 + $0xa8] sm:$0xff] (!%p192_p3)  }
   0xe   : > { %1165 = vmatpush3.bf16.msra.mxu1 %v1286_v7  ;;  %1126 = vmatprep.subr.bf16.mxu0 %v1287_v8  ;;  %s1588_s23 = smov (!%p236_p4, %s1055_s23), 15  ;;  %v1303_v24 = vld [vmem:[%s1580_s1 + $0x70] sm:$0xff]   ;;  %v1307_v28 = vld [vmem:[%s1580_s1 + $0x78] sm:$0xff]   ;;  %v1317_v36 = vld [vmem:[%s1580_s1 + $0x100] sm:$0xff]  }
   0xf   : > { %1166 = vmatprep.subr.bf16.mxu1 %v1288_v9  ;;  %v1304_v25 = vld [vmem:[%s1580_s1 + $0xf0] sm:$0xff]   ;;  %s1254_s22 = smul.u32 20, %s1588_s23  ;;  %v1308_v29 = vld [vmem:[%s1580_s1 + $0xf8] sm:$0xff]   ;;  %v1318_v37 = vld [vmem:[%s1580_s1 + $0x108] sm:$0xff]  }
  0x10   : > { %v1305_v26 = vld [vmem:[%s1580_s1 + $0x30] sm:$0xff]   ;;  %v1309_v30 = vld [vmem:[%s1580_s1 + $0x38] sm:$0xff]   ;;  %v1333_v46 = vld [vmem:[%s1580_s1 + $0x120] sm:$0xff]  }
  0x11   : > { %1127 = vmatpush3.bf16.msra.mxu0 %v1289_v10  ;;  %v1306_v27 = vld [vmem:[%s1580_s1 + $0xb0] sm:$0xff]   ;;  %s1508_s6 = scalar_lea.vmem %s1579_s0, %s1254_s22  ;;  %v1310_v31 = vld [vmem:[%s1580_s1 + $0xb8] sm:$0xff]   ;;  %v1334_v51 = vld [vmem:[%s1580_s1 + $0x128] sm:$0xff]  }
  0x12   : > { %1167 = vmatpush3.bf16.msra.mxu1 %v1290_v11  ;;  %1128 = vmatprep.subr.bf16.mxu0 %v1291_v12  ;;  %v1311_v32 = vld [vmem:[%s1508_s6] ss:$20 sps:$4 sm:$0xff]   ;;  %v1313_v33 = vld [vmem:[%s1508_s6 + $0x4] ss:$20 sps:$4 sm:$0xff]   ;;  %v1314_v34 = vld [vmem:[%s1508_s6 + $0x8] ss:$20 sps:$4 sm:$0xff]  }
  0x13   : > { %1168 = vmatprep.subr.bf16.mxu1 %v1292_v13  ;;  %v1316_v35 = vld [vmem:[%s1508_s6 + $0xc] ss:$20 sps:$4 sm:$0xff]   ;;  %755 = vmatprep.mubr.bf16.mxu0 %v1313_v33  ;;  %v1321_v39 = vld [vmem:[%s1508_s6 + $0x34] ss:$20 sps:$4 sm:$0xff]   ;;  %v1324_v42 = vld [vmem:[%s1508_s6 + $0x30] ss:$20 sps:$4 sm:$0xff]  }
  0x14   : > { %820 = vmatprep.mubr.bf16.mxu1 %v1316_v35  ;;  %v1319_v38 = vld [vmem:[%s1508_s6 + $0x2c] ss:$20 sps:$4 sm:$0xff]   ;;  %v1323_v40 = vld [vmem:[%s1508_s6 + $0x28] ss:$20 sps:$4 sm:$0xff]   ;;  %v1325_v41 = vld [vmem:[%s1580_s1 + $0x110] sm:$0xff]  }
  0x15   : > { %1129 = vmatpush3.bf16.msra.mxu0 %v1293_v14  ;;  %v1327_v43 = vld [vmem:[%s1508_s6 + $0x54] ss:$20 sps:$4 sm:$0xff]   ;;  %v1326_v44 = vld [vmem:[%s1580_s1 + $0x118] sm:$0xff]   ;;  %v1331_v47 = vld [vmem:[%s1508_s6 + $0x50] ss:$20 sps:$4 sm:$0xff]  }
  0x16   : > { %1169 = vmatpush3.bf16.msra.mxu1 %v1294_v15  ;;  %1130 = vmatprep.subr.bf16.mxu0 %v1295_v16  ;;  %v1329_v45 = vld [vmem:[%s1508_s6 + $0x5c] ss:$20 sps:$4 sm:$0xff]   ;;  %v1332_v48 = vld [vmem:[%s1508_s6 + $0x58] ss:$20 sps:$4 sm:$0xff]   ;;  %v1340_v54 = vld [vmem:[%s1508_s6 + $0x80] ss:$20 sps:$4 sm:$0xff]  }
  0x17   : > { %1170 = vmatprep.subr.bf16.mxu1 %v1296_v17  ;;  %v1335_v49 = vld [vmem:[%s1508_s6 + $0x7c] ss:$20 sps:$4 sm:$0xff]   ;;  %v1337_v50 = vld [vmem:[%s1508_s6 + $0x84] ss:$20 sps:$4 sm:$0xff]   ;;  %v1344_v56 = vld [vmem:[%s1508_s6 + $0x60] ss:$20 sps:$4 sm:$0xff]  }
  0x18   : > { %v1341_v52 = vld [vmem:[%s1580_s1 + $0x130] sm:$0xff]   ;;  %v1339_v53 = vld [vmem:[%s1508_s6 + $0x78] ss:$20 sps:$4 sm:$0xff]   ;;  %v1346_v59 = vld [vmem:[%s1508_s6 + $0x88] ss:$20 sps:$4 sm:$0xff]  }
  0x19   : > { %1131 = vmatpush3.bf16.msra.mxu0 %v1297_v18  ;;  %v1343_v55 = vld [vmem:[%s1508_s6 + $0x10] ss:$20 sps:$4 sm:$0xff]   ;;  %v1342_v57 = vld [vmem:[%s1580_s1 + $0x138] sm:$0xff]   ;;  %v1059_v62 = vld [vmem:[%s1581_s2] ss:$0 sm:$0xff] }
  0x1a   : > { %1171 = vmatpush3.bf16.msra.mxu1 %v1298_v19  ;;  %1132 = vmatprep.subr.bf16.mxu0 %v1299_v20  ;;  %v1345_v58 = vld [vmem:[%s1508_s6 + $0x38] ss:$20 sps:$4 sm:$0xff]   ;;  %s1058_s6 = sshll.u32 %s1588_s23, 3 }
  0x1b   : > { %1172 = vmatprep.subr.bf16.mxu1 %v1300_v21  ;;  %s265_s9 = scalar_lea.vmem %s1582_s3, %s1058_s6 }
  0x1d   : > { %1133 = vmatpush3.bf16.msra.mxu0 %v1301_v22 }
  0x1e   : > { %1173 = vmatpush3.bf16.msra.mxu1 %v1302_v23  ;;  %1134 = vmatprep.subr.bf16.mxu0 %v1303_v24 }
  0x1f   : > { %1174 = vmatprep.subr.bf16.mxu1 %v1304_v25 }
  0x21   : > { %1135 = vmatpush3.bf16.msra.mxu0 %v1305_v26 }
  0x22   : > { %1175 = vmatpush3.bf16.msra.mxu1 %v1306_v27  ;;  %1136 = vmatprep.subr.bf16.mxu0 %v1307_v28 }
  0x23   : > { %1176 = vmatprep.subr.bf16.mxu1 %v1308_v29 }
  0x25   : > { %1137 = vmatpush3.bf16.msra.mxu0 %v1309_v30 }
  0x26   : > { %1177 = vmatpush3.bf16.msra.mxu1 %v1310_v31  ;;  %1214 = vmatprep.subr.bf16.mxu0 %v1317_v36 }
  0x27   : > { %1238 = vmatprep.subr.bf16.mxu1 %v1317_v36 }
  0x28   : > { %756 = vmatmul.mubr.bf16.vlgmr.msra.gmra.mrb[0].mxu0 %v1311_v32 }
  0x29   : > { %821 = vmatmul.mubr.bf16.vlgmr.msra.gmra.mrb[0].mxu1 %v1314_v34  ;;  %1215 = vmatpush3.bf16.msra.mxu0 %v1317_v36 }
  0x2a   : > { %1246 = vmatpush3.bf16.msra.mxu1 %v1317_v36  ;;  %1216 = vmatprep.subr.bf16.mxu0 %v1318_v37 }
  0x2b   : > { %1239 = vmatprep.subr.bf16.mxu1 %v1318_v37  ;;  %763 = vmatprep.mubr.bf16.mxu0 %v1319_v38 }
  0x2c   : > { %828 = vmatprep.mubr.bf16.mxu1 %v1321_v39 }
  0x2d   : > { %1217 = vmatpush3.bf16.msra.mxu0 %v1318_v37 }
  0x2e   : > { %1247 = vmatpush3.bf16.msra.mxu1 %v1318_v37  ;;  %1218 = vmatprep.subr.bf16.mxu0 %v1325_v41 }
  0x2f   : > { %1240 = vmatprep.subr.bf16.mxu1 %v1325_v41 }
  0x30   : > { %764 = vmatmul.mubr.bf16.gmra.mrb[4].mxu0 %v1323_v40 }
  0x31   : > { %829 = vmatmul.mubr.bf16.gmra.mrb[4].mxu1 %v1324_v42  ;;  %771 = vmatprep.mubr.bf16.mxu0 %v1327_v43 }
  0x32   : > { %1219 = vmatpush3.bf16.msra.mxu0 %v1325_v41  ;;  %836 = vmatprep.mubr.bf16.mxu1 %v1329_v45 }
  0x33   : > { %1248 = vmatpush3.bf16.msra.mxu1 %v1325_v41  ;;  %1220 = vmatprep.subr.bf16.mxu0 %v1326_v44 }
  0x34   : > { %1241 = vmatprep.subr.bf16.mxu1 %v1326_v44 }
  0x36   : > { %1221 = vmatpush3.bf16.msra.mxu0 %v1326_v44 }
  0x37   : > { %1249 = vmatpush3.bf16.msra.mxu1 %v1326_v44  ;;  %1222 = vmatprep.subr.bf16.mxu0 %v1333_v46 }
  0x38   : > { %772 = vmatmul.mubr.bf16.gmra.mrb[8].mxu0 %v1331_v47  ;;  %1242 = vmatprep.subr.bf16.mxu1 %v1333_v46 }
  0x39   : > { %837 = vmatmul.mubr.bf16.gmra.mrb[8].mxu1 %v1332_v48  ;;  %779 = vmatprep.mubr.bf16.mxu0 %v1335_v49 }
  0x3a   : > { %1223 = vmatpush3.bf16.msra.mxu0 %v1333_v46  ;;  %844 = vmatprep.mubr.bf16.mxu1 %v1337_v50 }
  0x3b   : > { %1250 = vmatpush3.bf16.msra.mxu1 %v1333_v46  ;;  %1224 = vmatprep.subr.bf16.mxu0 %v1334_v51 }
  0x3c   : > { %1243 = vmatprep.subr.bf16.mxu1 %v1334_v51 }
  0x3e   : > { %1225 = vmatpush3.bf16.msra.mxu0 %v1334_v51 }
  0x3f   : > { %1251 = vmatpush3.bf16.msra.mxu1 %v1334_v51  ;;  %1226 = vmatprep.subr.bf16.mxu0 %v1341_v52 }
  0x40   : > { %780 = vmatmul.mubr.bf16.gmra.mrb[12].mxu0 %v1339_v53  ;;  %1244 = vmatprep.subr.bf16.mxu1 %v1341_v52 }
  0x41   : > { %845 = vmatmul.mubr.bf16.gmra.mrb[12].mxu1 %v1340_v54  ;;  %1230 = vmatprep.mubr.bf16.mxu0 %v1343_v55 }
  0x42   : > { %1227 = vmatpush3.bf16.msra.mxu0 %v1341_v52  ;;  %1234 = vmatprep.mubr.bf16.mxu1 %v1344_v56 }
  0x43   : > { %1252 = vmatpush3.bf16.msra.mxu1 %v1341_v52  ;;  %1228 = vmatprep.subr.bf16.mxu0 %v1342_v57 }
  0x44   : > { %1245 = vmatprep.subr.bf16.mxu1 %v1342_v57 }
  0x46   : > { %1229 = vmatpush3.bf16.msra.mxu0 %v1342_v57 }
  0x47   : > { %1253 = vmatpush3.bf16.msra.mxu1 %v1342_v57 }
  0x49   : > { %1231 = vmatmul.mubr.bf16.vlgmr.msra.gmra.mrb[16].mxu0 %v1345_v58 }
  0x4a   : > { %1235 = vmatmul.mubr.bf16.vlgmr.msra.gmra.mrb[16].mxu1 %v1346_v59 }
  0xfb   : > { %v1138_v60 = vpop.f32.mrb[0].mxu0 }
  0xfc   : > { %v1178_v61 = vpop.f32.mrb[0].mxu1  ;;  %v1139_v63 = vpop.f32.mrb[1].mxu0 }
  0xfd   : > { %v1140_v0 = vadd.f32 %v1139_v63, %v1138_v60  ;;  %v1179_v1 = vpop.f32.mrb[1].mxu1  ;;  %v1141_v2 = vpop.f32.mrb[2].mxu0 }
  0xfe   : > { %v1180_v3 = vadd.f32 %v1179_v1, %v1178_v61  ;;  %v1181_v4 = vpop.f32.mrb[2].mxu1  ;;  %v1142_v5 = vpop.f32.mrb[3].mxu0 }
  0xff   : > { %v758_v6 = vadd.f32 %v1140_v0, %v1059_v62  ;;  %v1143_v7 = vadd.f32 %v1142_v5, %v1141_v2  ;;  %v1182_v8 = vpop.f32.mrb[3].mxu1 }
 0x100   : > { %v1183_v9 = vadd.f32 %v1182_v8, %v1181_v4 }
 0x101   : > { %v761_v10 = vadd.f32 %v1143_v7, %v1059_v62  ;;  %v823_v11 = vadd.f32 %v1180_v3, %v758_v6 }
 0x103   : > { %v1144_v12 = vpop.f32.mrb[4].mxu0  ;;  %v1563_v13 = vadd.f32 %v1183_v9, %v761_v10 }
 0x104   : > { %v1184_v14 = vpop.f32.mrb[4].mxu1  ;;  %v1145_v15 = vpop.f32.mrb[5].mxu0 }
 0x105   : > { %v1146_v16 = vadd.f32 %v1145_v15, %v1144_v12  ;;  %v1185_v17 = vpop.f32.mrb[5].mxu1  ;;  %v1147_v18 = vpop.f32.mrb[6].mxu0 }
 0x106   : > { %v1186_v19 = vadd.f32 %v1185_v17, %v1184_v14  ;;  %v1187_v20 = vpop.f32.mrb[6].mxu1  ;;  %v1148_v21 = vpop.f32.mrb[7].mxu0 }
 0x107   : > { %v766_v22 = vadd.f32 %v1146_v16, %v1059_v62  ;;  %v1149_v23 = vadd.f32 %v1148_v21, %v1147_v18  ;;  %v1188_v24 = vpop.f32.mrb[7].mxu1 }
 0x108   : > { %v1189_v25 = vadd.f32 %v1188_v24, %v1187_v20 }
 0x109   : > { %v769_v26 = vadd.f32 %v1149_v23, %v1059_v62  ;;  %v831_v27 = vadd.f32 %v1186_v19, %v766_v22 }
 0x10b   : > { %v1150_v28 = vpop.f32.mrb[8].mxu0  ;;  %v834_v29 = vadd.f32 %v1189_v25, %v769_v26 }
 0x10c   : > { %v1190_v30 = vpop.f32.mrb[8].mxu1  ;;  %v1151_v31 = vpop.f32.mrb[9].mxu0 }
 0x10d   : > { %v1152_v32 = vadd.f32 %v1151_v31, %v1150_v28  ;;  %v1191_v33 = vpop.f32.mrb[9].mxu1  ;;  %v1153_v34 = vpop.f32.mrb[10].mxu0 }
 0x10e   : > { %v1192_v35 = vadd.f32 %v1191_v33, %v1190_v30  ;;  %v1193_v36 = vpop.f32.mrb[10].mxu1  ;;  %v1154_v37 = vpop.f32.mrb[11].mxu0 }
 0x10f   : > { %v774_v38 = vadd.f32 %v1152_v32, %v1059_v62  ;;  %v1155_v39 = vadd.f32 %v1154_v37, %v1153_v34  ;;  %v1194_v40 = vpop.f32.mrb[11].mxu1 }
 0x110   : > { %v1195_v41 = vadd.f32 %v1194_v40, %v1193_v36 }
 0x111   : > { %v777_v42 = vadd.f32 %v1155_v39, %v1059_v62  ;;  %v839_v43 = vadd.f32 %v1192_v35, %v774_v38 }
 0x113   : > { %v1156_v44 = vpop.f32.mrb[12].mxu0  ;;  %v842_v45 = vadd.f32 %v1195_v41, %v777_v42 }
 0x114   : > { %v1196_v46 = vpop.f32.mrb[12].mxu1  ;;  %v1157_v47 = vpop.f32.mrb[13].mxu0 }
 0x115   : > { %v1158_v48 = vadd.f32 %v1157_v47, %v1156_v44  ;;  %v1197_v49 = vpop.f32.mrb[13].mxu1  ;;  %v1159_v50 = vpop.f32.mrb[14].mxu0 }
 0x116   : > { %v1198_v51 = vadd.f32 %v1197_v49, %v1196_v46  ;;  %v1199_v52 = vpop.f32.mrb[14].mxu1  ;;  %v1160_v53 = vpop.f32.mrb[15].mxu0 }
 0x117   : > { %v782_v54 = vadd.f32 %v1158_v48, %v1059_v62  ;;  %v1161_v55 = vadd.f32 %v1160_v53, %v1159_v50  ;;  %v1200_v56 = vpop.f32.mrb[15].mxu1 }
 0x118   : > { %v1201_v57 = vadd.f32 %v1200_v56, %v1199_v52 }
 0x119   : > { %v785_v58 = vadd.f32 %v1161_v55, %v1059_v62  ;;  %v847_v59 = vadd.f32 %v1198_v51, %v782_v54 }
 0x11b   : > { %v850_v60 = vadd.f32 %v1201_v57, %v785_v58 }
 0x11c   : > { %v1232_v61 = vpop.f32.mrb[16].mxu0 }
 0x11d   : > { %v896_v63 = vadd.f32 %v1232_v61, %v831_v27  ;;  %v1236_v0 = vpop.f32.mrb[16].mxu1  ;;  %v887_v1 = vpop.f32.mrb[17].mxu0 }
 0x11e   : > { %v912_v2 = vadd.f32 %v1236_v0, %v847_v59  ;;  %v888_v3 = vadd.f32 %v887_v1, %v823_v11  ;;  %v903_v4 = vpop.f32.mrb[17].mxu1  ;;  %v1233_v5 = vpop.f32.mrb[18].mxu0 }
 0x11f   : > { %v920_v6 = vmax.f32 %v896_v63, 0.0  ;;  %v904_v7 = vadd.f32 %v903_v4, %v839_v43  ;;  %v899_v8 = vadd.f32 %v1233_v5, %v834_v29  ;;  %v1237_v9 = vpop.f32.mrb[18].mxu1  ;;  %v890_v62 = vpop.f32.mrb[19].mxu0 }
 0x120   : > { %v924_v10 = vmax.f32 %v912_v2, 0.0  ;;  %v918_v12 = vmax.f32 %v888_v3, 0.0  ;;  %v915_v14 = vadd.f32 %v1237_v9, %v850_v60  ;;  %v891_v15 = vadd.f32 %v890_v62, %v1563_v13  ;;  %v906_v16 = vpop.f32.mrb[19].mxu1 }
 0x121   : > { %928 = vst [vmem:[%s265_s9 + $0x10] sm:$0xff] %v920_v6  ;;  %v922_v17 = vmax.f32 %v904_v7, 0.0  ;;  %v921_v18 = vmax.f32 %v899_v8, 0.0  ;;  %v907_v19 = vadd.f32 %v906_v16, %v842_v45 }
 0x122   : > { %932 = vst [vmem:[%s265_s9 + $0x30] sm:$0xff] %v924_v10  ;;  %926 = vst [vmem:[%s265_s9] sm:$0xff] %v918_v12  ;;  %v925_v11 = vmax.f32 %v915_v14, 0.0  ;;  %v919_v20 = vmax.f32 %v891_v15, 0.0 }
 0x123   : > { %930 = vst [vmem:[%s265_s9 + $0x20] sm:$0xff] %v922_v17  ;;  %929 = vst [vmem:[%s265_s9 + $0x18] sm:$0xff] %v921_v18  ;;  %v923_v21 = vmax.f32 %v907_v19, 0.0 }
 0x124   : > { %933 = vst [vmem:[%s265_s9 + $0x38] sm:$0xff] %v925_v11  ;;  %927 = vst [vmem:[%s265_s9 + $0x8] sm:$0xff] %v919_v20 }
 0x125   : > { %931 = vst [vmem:[%s265_s9 + $0x28] sm:$0xff] %v923_v21 }
 0x126 PF: > { %s13_s14 = sadd.s32 1, %s1369_s14   ;;  %s1583_s12 = smov %s1365_s13 }
 0x127   : > { %p10_p5 = scmp.ge.s32.totalorder %s13_s14, 4   ;;  %s1584_s13 = smov %s1586_s15 }
 0x129   :  { %12 = sbr.rel (!%p10_p5) target bundleno = 2 (0x2), region = 68 }

// kernel: forward.7
= control target key start
LH: loop header
LB: loop body
LE: loop exit
PB: predicated region body
PF: predicated region fallthrough
CT: control target
= control target key end

     0   :  { %9 = vsyncpa [#allocation3], 0  ;;  %s1864_s0 = inlined_call_operand.vmem [shape: bf16[128,640], index: 0, kind: input, shape index: {}]   ;;  %s1865_s1 = inlined_call_operand.vmem [shape: bf16[640,128], index: 1, kind: input, shape index: {}]   ;;  %s1866_s2 = inlined_call_operand.vmem [shape: f32[1,128], index: 2, kind: input, shape index: {}]   ;;  %s1867_s3 = inlined_call_operand.vmem [shape: f32[128,128], index: 3, kind: input, shape index: {}]   ;;  %s1868_s4 = inlined_call_operand.hbm [shape: f32[128,128], index: 4, kind: output, shape index: {}]  }
   0x1   :  { %11 = vsyncpa [#allocation3 + $0x1], 0  ;;  %s1588_s15 = smov 0   ;;  %s1590_s16 = smov 0  }
   0x2   :  { %s1592_s17 = smov 0   ;;  %s1594_s18 = smov 0  }
   0x3   :  { %s1596_s19 = smov 0   ;;  %s1598_s20 = smov 0  }
   0x4 LB: > { %s1143_s21 = sadd.s32 4294967295, %s1558_s20   ;;  %s1144_s22 = sadd.s32 4294967294, %s1558_s20   ;;  %s1558_s20 = sphi %s1598_s20, %s17_s20   ;;  %s1554_s19 = sphi %s1596_s19, %s1875_s19   ;;  %s1550_s18 = sphi %s1594_s18, %s1874_s18   ;;  %s1546_s17 = sphi %s1592_s17, %s1873_s17   ;;  %s1542_s16 = sphi %s1590_s16, %s1872_s16   ;;  %s1538_s15 = sphi %s1588_s15, %s1871_s15  }
   0x5   : > { %s36_s23 = sadd.s32 1, %s1554_s19  ;;  %s155_s24 = sadd.s32 1, %s1546_s17 }
   0x6   : > { %p38_p0 = scmp.ge.s32.totalorder %s36_s23, 2  ;;  %p165_p1 = scmp.ne.s32.totalorder %s1546_s17, %s1542_s16 }
   0x7   : > { %p166_p2 = scmp.eq.s32.totalorder %s1143_s21, 1  ;;  %p171_p3 = scmp.ne.s32.totalorder %s1542_s16, %s1538_s15 }
   0x8   : > { %s1877_s23 = smov (%p38_p0, %s36_s23), 0  ;;  %p172_p5 = scmp.eq.s32.totalorder %s1144_s22, 1 }
   0x9   : > { %p1628_p4 = por %p166_p2, %p165_p1  ;;  %s150_s26 = ssub.s32 %s1554_s19, %s1877_s23 }
   0xa   : > { %p1149_p6 = scmp.ge.s32.totalorder %s1558_s20, 1  ;;  %p153_p7 = scmp.eq.s32.totalorder %s150_s26, 0 }
   0xb   : > { %p1635_p8 = por %p172_p5, %p171_p3  ;;  %p235_p9 = scmp.lt.s32.totalorder %s1558_s20, 3 }
   0xc   : > { %s1641_s28 = scalar_select %p153_p7, %s1546_s17, %s155_s24  }
   0xd   : > { %p236_p10 = pnand %p1149_p6, %p235_p9 }
   0xe   : > { %v1412_v0 = vld [vmem:[%s1865_s1 + $0x40] sm:$0xff] (!%p236_p10)   ;;  %v1416_v4 = vld [vmem:[%s1865_s1 + $0x48] sm:$0xff] (!%p236_p10)   ;;  %v1420_v8 = vld [vmem:[%s1865_s1 + $0x50] sm:$0xff] (!%p236_p10)   ;;  %s1151_s24 = sshll.u32 (!%p236_p10), %s1550_s18, 3  ;;  %s282_s26 = sand.u32 (!%p236_p10), 1, %s1542_s16  }
   0xf   : > { %239 = sbr.rel (%p236_p10) target bundleno = 318 (0x13e), region = 36  ;;  %v1413_v1 = vld [vmem:[%s1865_s1 + $0xc0] sm:$0xff] (!%p236_p10)   ;;  %1222 = vmatprep.subr.bf16.mxu0 (!%p236_p10), %v1412_v0  ;;  %v1417_v5 = vld [vmem:[%s1865_s1 + $0xc8] sm:$0xff] (!%p236_p10)   ;;  %v1421_v9 = vld [vmem:[%s1865_s1 + $0xd0] sm:$0xff] (!%p236_p10)   ;;  %p287_p11 = scmp.lt.s32.totalorder (!%p236_p10), %s1151_s24, 15 }
  0x10   : > { %v1414_v2 = vld [vmem:[%s1865_s1] sm:$0xff] (!%p236_p10)   ;;  %1262 = vmatprep.subr.bf16.mxu1 (!%p236_p10), %v1413_v1  ;;  %v1418_v6 = vld [vmem:[%s1865_s1 + $0x8] sm:$0xff] (!%p236_p10)   ;;  %v1422_v10 = vld [vmem:[%s1865_s1 + $0x10] sm:$0xff] (!%p236_p10)   ;;  %s1804_s29 = sshll.u32 (!%p236_p10), %s282_s26, 6  ;;  %s1818_s10 = scalar_lea.sflag (!%p236_p10), [#allocation3], %s282_s26 }
  0x11   : > { %v1415_v3 = vld [vmem:[%s1865_s1 + $0x80] sm:$0xff] (!%p236_p10)   ;;  %1223 = vmatpush3.bf16.msra.mxu0 (!%p236_p10), %v1414_v2  ;;  %v1419_v7 = vld [vmem:[%s1865_s1 + $0x88] sm:$0xff] (!%p236_p10)   ;;  %v1423_v11 = vld [vmem:[%s1865_s1 + $0x90] sm:$0xff] (!%p236_p10)   ;;  %s284_s30 = scalar_lea.vmem (!%p236_p10), [#allocation2], %s1804_s29  ;;  %s1560_s11 = smov (!%p236_p10), [#allocation2]  }
  0x12   : > { %1263 = vmatpush3.bf16.msra.mxu1 (!%p236_p10), %v1415_v3  ;;  %1224 = vmatprep.subr.bf16.mxu0 (!%p236_p10), %v1416_v4  ;;  %v1424_v12 = vld [vmem:[%s1865_s1 + $0x58] sm:$0xff] (!%p236_p10)   ;;  %v1428_v16 = vld [vmem:[%s1865_s1 + $0x60] sm:$0xff] (!%p236_p10)   ;;  %v1432_v20 = vld [vmem:[%s1865_s1 + $0x68] sm:$0xff] (!%p236_p10)   ;;  %s1017_s6 = sshll.u32 (!%p236_p10), %s284_s30, 4  ;;  %s1484_s12 = sshll.u32 (!%p236_p10), %s1560_s11, 4  ;;  %s1814_s6 = int_to_ptr.vmem [resolvable:$true] %s1017_s6  ;;  %s1485_s12 = int_to_ptr.vmem [resolvable:$false] %s1484_s12 }
  0x13   : > { %1264 = vmatprep.subr.bf16.mxu1 (!%p236_p10), %v1417_v5  ;;  %v1425_v13 = vld [vmem:[%s1865_s1 + $0xd8] sm:$0xff] (!%p236_p10)   ;;  %v1429_v17 = vld [vmem:[%s1865_s1 + $0xe0] sm:$0xff] (!%p236_p10)   ;;  %v1433_v21 = vld [vmem:[%s1865_s1 + $0xe8] sm:$0xff] (!%p236_p10)   ;;  %s1486_s13 = scalar_lea.vmem (!%p236_p10), %s1485_s12, 2048  ;;  %p1487_p1 = scmp.lt.s32.totalorder (!%p236_p10), %s1814_s6, %s1485_s12 }
  0x14   : > { %v1426_v14 = vld [vmem:[%s1865_s1 + $0x18] sm:$0xff] (!%p236_p10)   ;;  %v1430_v18 = vld [vmem:[%s1865_s1 + $0x20] sm:$0xff] (!%p236_p10)   ;;  %v1434_v22 = vld [vmem:[%s1865_s1 + $0x28] sm:$0xff] (!%p236_p10)  }
  0x15   : > { %1225 = vmatpush3.bf16.msra.mxu0 (!%p236_p10), %v1418_v6  ;;  %v1427_v15 = vld [vmem:[%s1865_s1 + $0x98] sm:$0xff] (!%p236_p10)   ;;  %v1431_v19 = vld [vmem:[%s1865_s1 + $0xa0] sm:$0xff] (!%p236_p10)   ;;  %v1435_v23 = vld [vmem:[%s1865_s1 + $0xa8] sm:$0xff] (!%p236_p10)  }
  0x16   : > { %1265 = vmatpush3.bf16.msra.mxu1 %v1419_v7  ;;  %1226 = vmatprep.subr.bf16.mxu0 %v1420_v8  ;;  %s1879_s24 = smov (!%p287_p11, %s1151_s24), 15  ;;  %v1436_v24 = vld [vmem:[%s1865_s1 + $0x70] sm:$0xff]   ;;  %v1440_v28 = vld [vmem:[%s1865_s1 + $0x78] sm:$0xff]   ;;  %v1450_v36 = vld [vmem:[%s1865_s1 + $0x100] sm:$0xff]  }
  0x17   : > { %1266 = vmatprep.subr.bf16.mxu1 %v1421_v9  ;;  %v1437_v25 = vld [vmem:[%s1865_s1 + $0xf0] sm:$0xff]   ;;  %s1354_s9 = smul.u32 20, %s1879_s24  ;;  %v1441_v29 = vld [vmem:[%s1865_s1 + $0xf8] sm:$0xff]   ;;  %v1451_v37 = vld [vmem:[%s1865_s1 + $0x108] sm:$0xff]  }
  0x18   : > { %v1438_v26 = vld [vmem:[%s1865_s1 + $0x30] sm:$0xff]   ;;  %v1442_v30 = vld [vmem:[%s1865_s1 + $0x38] sm:$0xff]   ;;  %v1466_v46 = vld [vmem:[%s1865_s1 + $0x120] sm:$0xff]  }
  0x19   : > { %1227 = vmatpush3.bf16.msra.mxu0 %v1422_v10  ;;  %v1439_v27 = vld [vmem:[%s1865_s1 + $0xb0] sm:$0xff]   ;;  %s1740_s5 = scalar_lea.vmem %s1864_s0, %s1354_s9  ;;  %v1443_v31 = vld [vmem:[%s1865_s1 + $0xb8] sm:$0xff]   ;;  %v1467_v51 = vld [vmem:[%s1865_s1 + $0x128] sm:$0xff]   ;;  %s1480_s9 = scalar_lea.vmem %s1814_s6, 1024 }
  0x1a   : > { %1267 = vmatpush3.bf16.msra.mxu1 %v1423_v11  ;;  %1228 = vmatprep.subr.bf16.mxu0 %v1424_v12  ;;  %v1444_v32 = vld [vmem:[%s1740_s5] ss:$20 sps:$4 sm:$0xff]   ;;  %v1446_v33 = vld [vmem:[%s1740_s5 + $0x4] ss:$20 sps:$4 sm:$0xff]   ;;  %v1447_v34 = vld [vmem:[%s1740_s5 + $0x8] ss:$20 sps:$4 sm:$0xff]   ;;  %p1481_p12 = scmp.ne.s32.totalorder %s1814_s6, %s1480_s9  ;;  %p1488_p2 = scmp.lt.s32.totalorder %s1486_s13, %s1480_s9 }
  0x1b   : > { %1268 = vmatprep.subr.bf16.mxu1 %v1425_v13  ;;  %v1449_v35 = vld [vmem:[%s1740_s5 + $0xc] ss:$20 sps:$4 sm:$0xff]   ;;  %807 = vmatprep.mubr.bf16.mxu0 %v1446_v33  ;;  %v1454_v39 = vld [vmem:[%s1740_s5 + $0x34] ss:$20 sps:$4 sm:$0xff]   ;;  %v1457_v42 = vld [vmem:[%s1740_s5 + $0x30] ss:$20 sps:$4 sm:$0xff]  }
  0x1c   : > { %872 = vmatprep.mubr.bf16.mxu1 %v1449_v35  ;;  %v1452_v38 = vld [vmem:[%s1740_s5 + $0x2c] ss:$20 sps:$4 sm:$0xff]   ;;  %v1456_v40 = vld [vmem:[%s1740_s5 + $0x28] ss:$20 sps:$4 sm:$0xff]   ;;  %v1458_v41 = vld [vmem:[%s1865_s1 + $0x110] sm:$0xff]   ;;  %p1482_p13 = pnand %p1481_p12, %p1628_p4  ;;  %p1489_p3 = por %p1488_p2, %p1487_p1 }
  0x1d   : > { %1229 = vmatpush3.bf16.msra.mxu0 %v1426_v14  ;;  %v1460_v43 = vld [vmem:[%s1740_s5 + $0x54] ss:$20 sps:$4 sm:$0xff]   ;;  %v1459_v44 = vld [vmem:[%s1865_s1 + $0x118] sm:$0xff]   ;;  %v1464_v47 = vld [vmem:[%s1740_s5 + $0x50] ss:$20 sps:$4 sm:$0xff]  }
  0x1e   : > { %1269 = vmatpush3.bf16.msra.mxu1 %v1427_v15  ;;  %1230 = vmatprep.subr.bf16.mxu0 %v1428_v16  ;;  %v1462_v45 = vld [vmem:[%s1740_s5 + $0x5c] ss:$20 sps:$4 sm:$0xff]   ;;  %v1465_v48 = vld [vmem:[%s1740_s5 + $0x58] ss:$20 sps:$4 sm:$0xff]   ;;  %v1473_v54 = vld [vmem:[%s1740_s5 + $0x80] ss:$20 sps:$4 sm:$0xff]   ;;  %p1483_p0 = pneg %p1482_p13 }
  0x1f   : > { %1270 = vmatprep.subr.bf16.mxu1 %v1429_v17  ;;  %v1468_v49 = vld [vmem:[%s1740_s5 + $0x7c] ss:$20 sps:$4 sm:$0xff]   ;;  %v1470_v50 = vld [vmem:[%s1740_s5 + $0x84] ss:$20 sps:$4 sm:$0xff]   ;;  %v1477_v56 = vld [vmem:[%s1740_s5 + $0x60] ss:$20 sps:$4 sm:$0xff]  }
  0x20   : > { %v1474_v52 = vld [vmem:[%s1865_s1 + $0x130] sm:$0xff]   ;;  %v1472_v53 = vld [vmem:[%s1740_s5 + $0x78] ss:$20 sps:$4 sm:$0xff]   ;;  %v1479_v59 = vld [vmem:[%s1740_s5 + $0x88] ss:$20 sps:$4 sm:$0xff]   ;;  %p1490_p5 = pnand %p1489_p3, %p1483_p0 }
  0x21   : > { %1231 = vmatpush3.bf16.msra.mxu0 %v1430_v18  ;;  %v1476_v55 = vld [vmem:[%s1740_s5 + $0x10] ss:$20 sps:$4 sm:$0xff]   ;;  %v1475_v57 = vld [vmem:[%s1865_s1 + $0x138] sm:$0xff]   ;;  %v1155_v62 = vld [vmem:[%s1866_s2] ss:$0 sm:$0xff] }
  0x22   : > { %1271 = vmatpush3.bf16.msra.mxu1 %v1431_v19  ;;  %1232 = vmatprep.subr.bf16.mxu0 %v1432_v20  ;;  %v1478_v58 = vld [vmem:[%s1740_s5 + $0x38] ss:$20 sps:$4 sm:$0xff]   ;;  %s1154_s5 = sshll.u32 %s1879_s24, 3  ;;  %s1221_s24 = sshll.u32 %s1550_s18, 10 }
  0x23   : > { %1272 = vmatprep.subr.bf16.mxu1 %v1433_v21  ;;  %s316_s22 = scalar_lea.vmem %s1867_s3, %s1154_s5  ;;  %s1812_s18 = scalar_lea.hbm %s1868_s4, %s1221_s24 }
  0x25   : > { %1233 = vmatpush3.bf16.msra.mxu0 %v1434_v22 }
  0x26   : > { %1273 = vmatpush3.bf16.msra.mxu1 %v1435_v23  ;;  %1234 = vmatprep.subr.bf16.mxu0 %v1436_v24 }
  0x27   : > { %1274 = vmatprep.subr.bf16.mxu1 %v1437_v25 }
  0x29   : > { %1235 = vmatpush3.bf16.msra.mxu0 %v1438_v26 }
  0x2a   : > { %1275 = vmatpush3.bf16.msra.mxu1 %v1439_v27  ;;  %1236 = vmatprep.subr.bf16.mxu0 %v1440_v28 }
  0x2b   : > { %1276 = vmatprep.subr.bf16.mxu1 %v1441_v29 }
  0x2d   : > { %1237 = vmatpush3.bf16.msra.mxu0 %v1442_v30 }
  0x2e   : > { %1277 = vmatpush3.bf16.msra.mxu1 %v1443_v31  ;;  %1314 = vmatprep.subr.bf16.mxu0 %v1450_v36 }
  0x2f   : > { %1338 = vmatprep.subr.bf16.mxu1 %v1450_v36 }
  0x30   : > { %808 = vmatmul.mubr.bf16.vlgmr.msra.gmra.mrb[0].mxu0 %v1444_v32 }
  0x31   : > { %873 = vmatmul.mubr.bf16.vlgmr.msra.gmra.mrb[0].mxu1 %v1447_v34  ;;  %1315 = vmatpush3.bf16.msra.mxu0 %v1450_v36 }
  0x32   : > { %1346 = vmatpush3.bf16.msra.mxu1 %v1450_v36  ;;  %1316 = vmatprep.subr.bf16.mxu0 %v1451_v37 }
  0x33   : > { %1339 = vmatprep.subr.bf16.mxu1 %v1451_v37  ;;  %815 = vmatprep.mubr.bf16.mxu0 %v1452_v38 }
  0x34   : > { %880 = vmatprep.mubr.bf16.mxu1 %v1454_v39 }
  0x35   : > { %1317 = vmatpush3.bf16.msra.mxu0 %v1451_v37 }
  0x36   : > { %1347 = vmatpush3.bf16.msra.mxu1 %v1451_v37  ;;  %1318 = vmatprep.subr.bf16.mxu0 %v1458_v41 }
  0x37   : > { %1340 = vmatprep.subr.bf16.mxu1 %v1458_v41 }
  0x38   : > { %816 = vmatmul.mubr.bf16.gmra.mrb[4].mxu0 %v1456_v40 }
  0x39   : > { %881 = vmatmul.mubr.bf16.gmra.mrb[4].mxu1 %v1457_v42  ;;  %823 = vmatprep.mubr.bf16.mxu0 %v1460_v43 }
  0x3a   : > { %1319 = vmatpush3.bf16.msra.mxu0 %v1458_v41  ;;  %888 = vmatprep.mubr.bf16.mxu1 %v1462_v45 }
  0x3b   : > { %1348 = vmatpush3.bf16.msra.mxu1 %v1458_v41  ;;  %1320 = vmatprep.subr.bf16.mxu0 %v1459_v44 }
  0x3c   : > { %1341 = vmatprep.subr.bf16.mxu1 %v1459_v44 }
  0x3e   : > { %1321 = vmatpush3.bf16.msra.mxu0 %v1459_v44 }
  0x3f   : > { %1349 = vmatpush3.bf16.msra.mxu1 %v1459_v44  ;;  %1322 = vmatprep.subr.bf16.mxu0 %v1466_v46 }
  0x40   : > { %824 = vmatmul.mubr.bf16.gmra.mrb[8].mxu0 %v1464_v47  ;;  %1342 = vmatprep.subr.bf16.mxu1 %v1466_v46 }
  0x41   : > { %889 = vmatmul.mubr.bf16.gmra.mrb[8].mxu1 %v1465_v48  ;;  %831 = vmatprep.mubr.bf16.mxu0 %v1468_v49 }
  0x42   : > { %1323 = vmatpush3.bf16.msra.mxu0 %v1466_v46  ;;  %896 = vmatprep.mubr.bf16.mxu1 %v1470_v50 }
  0x43   : > { %1350 = vmatpush3.bf16.msra.mxu1 %v1466_v46  ;;  %1324 = vmatprep.subr.bf16.mxu0 %v1467_v51 }
  0x44   : > { %1343 = vmatprep.subr.bf16.mxu1 %v1467_v51 }
  0x46   : > { %1325 = vmatpush3.bf16.msra.mxu0 %v1467_v51 }
  0x47   : > { %1351 = vmatpush3.bf16.msra.mxu1 %v1467_v51  ;;  %1326 = vmatprep.subr.bf16.mxu0 %v1474_v52 }
  0x48   : > { %832 = vmatmul.mubr.bf16.gmra.mrb[12].mxu0 %v1472_v53  ;;  %1344 = vmatprep.subr.bf16.mxu1 %v1474_v52 }
  0x49   : > { %897 = vmatmul.mubr.bf16.gmra.mrb[12].mxu1 %v1473_v54  ;;  %1330 = vmatprep.mubr.bf16.mxu0 %v1476_v55 }
  0x4a   : > { %1327 = vmatpush3.bf16.msra.mxu0 %v1474_v52  ;;  %1334 = vmatprep.mubr.bf16.mxu1 %v1477_v56 }
  0x4b   : > { %1352 = vmatpush3.bf16.msra.mxu1 %v1474_v52  ;;  %1328 = vmatprep.subr.bf16.mxu0 %v1475_v57 }
  0x4c   : > { %1345 = vmatprep.subr.bf16.mxu1 %v1475_v57 }
  0x4e   : > { %1329 = vmatpush3.bf16.msra.mxu0 %v1475_v57 }
  0x4f   : > { %1353 = vmatpush3.bf16.msra.mxu1 %v1475_v57 }
  0x51   : > { %1331 = vmatmul.mubr.bf16.vlgmr.msra.gmra.mrb[16].mxu0 %v1478_v58 }
  0x52   : > { %1335 = vmatmul.mubr.bf16.vlgmr.msra.gmra.mrb[16].mxu1 %v1479_v59 }
 0x103   : > { %v1238_v60 = vpop.f32.mrb[0].mxu0 }
 0x104   : > { %v1278_v61 = vpop.f32.mrb[0].mxu1  ;;  %v1239_v63 = vpop.f32.mrb[1].mxu0 }
 0x105   : > { %v1240_v0 = vadd.f32 %v1239_v63, %v1238_v60  ;;  %v1279_v1 = vpop.f32.mrb[1].mxu1  ;;  %v1241_v2 = vpop.f32.mrb[2].mxu0  ;;  %v972_v63 = vld [vmem:[%s316_s22 + $0x10] sm:$0xff] }
 0x106   : > { %v1280_v3 = vadd.f32 %v1279_v1, %v1278_v61  ;;  %v1281_v4 = vpop.f32.mrb[2].mxu1  ;;  %v1242_v5 = vpop.f32.mrb[3].mxu0 }
 0x107   : > { %v810_v6 = vadd.f32 %v1240_v0, %v1155_v62  ;;  %v1243_v7 = vadd.f32 %v1242_v5, %v1241_v2  ;;  %v1282_v8 = vpop.f32.mrb[3].mxu1  ;;  %v976_v2 = vld [vmem:[%s316_s22 + $0x30] sm:$0xff] }
 0x108   : > { %v1283_v9 = vadd.f32 %v1282_v8, %v1281_v4  ;;  %v970_v4 = vld [vmem:[%s316_s22] sm:$0xff] }
 0x109   : > { %v813_v10 = vadd.f32 %v1243_v7, %v1155_v62  ;;  %v875_v11 = vadd.f32 %v1280_v3, %v810_v6  ;;  %v974_v7 = vld [vmem:[%s316_s22 + $0x20] sm:$0xff] }
 0x10b   : > { %v1244_v12 = vpop.f32.mrb[4].mxu0  ;;  %v1795_v13 = vadd.f32 %v1283_v9, %v813_v10  ;;  %v973_v9 = vld [vmem:[%s316_s22 + $0x18] sm:$0xff] }
 0x10c   : > { %v1284_v14 = vpop.f32.mrb[4].mxu1  ;;  %v1245_v15 = vpop.f32.mrb[5].mxu0 }
 0x10d   : > { %v1246_v16 = vadd.f32 %v1245_v15, %v1244_v12  ;;  %v1285_v17 = vpop.f32.mrb[5].mxu1  ;;  %v1247_v18 = vpop.f32.mrb[6].mxu0 }
 0x10e   : > { %v1286_v19 = vadd.f32 %v1285_v17, %v1284_v14  ;;  %v1287_v20 = vpop.f32.mrb[6].mxu1  ;;  %v1248_v21 = vpop.f32.mrb[7].mxu0 }
 0x10f   : > { %v818_v22 = vadd.f32 %v1246_v16, %v1155_v62  ;;  %v1249_v23 = vadd.f32 %v1248_v21, %v1247_v18  ;;  %v1288_v24 = vpop.f32.mrb[7].mxu1  ;;  %v977_v16 = vld [vmem:[%s316_s22 + $0x38] sm:$0xff]  ;;  %v971_v18 = vld [vmem:[%s316_s22 + $0x8] sm:$0xff] }
 0x110   : > { %v1289_v25 = vadd.f32 %v1288_v24, %v1287_v20 }
 0x111   : > { %v821_v26 = vadd.f32 %v1249_v23, %v1155_v62  ;;  %v883_v27 = vadd.f32 %v1286_v19, %v818_v22 }
 0x113   : > { %v1250_v28 = vpop.f32.mrb[8].mxu0  ;;  %v886_v29 = vadd.f32 %v1289_v25, %v821_v26 }
 0x114   : > { %v1290_v30 = vpop.f32.mrb[8].mxu1  ;;  %v1251_v31 = vpop.f32.mrb[9].mxu0 }
 0x115   : > { %v1252_v32 = vadd.f32 %v1251_v31, %v1250_v28  ;;  %v1291_v33 = vpop.f32.mrb[9].mxu1  ;;  %v1253_v34 = vpop.f32.mrb[10].mxu0 }
 0x116   : > { %v1292_v35 = vadd.f32 %v1291_v33, %v1290_v30  ;;  %v1293_v36 = vpop.f32.mrb[10].mxu1  ;;  %v1254_v37 = vpop.f32.mrb[11].mxu0 }
 0x117   : > { %v826_v38 = vadd.f32 %v1252_v32, %v1155_v62  ;;  %v1255_v39 = vadd.f32 %v1254_v37, %v1253_v34  ;;  %v1294_v40 = vpop.f32.mrb[11].mxu1 }
 0x118   : > { %v1295_v41 = vadd.f32 %v1294_v40, %v1293_v36 }
 0x119   : > { %v829_v42 = vadd.f32 %v1255_v39, %v1155_v62  ;;  %v891_v43 = vadd.f32 %v1292_v35, %v826_v38 }
 0x11b   : > { %v1256_v44 = vpop.f32.mrb[12].mxu0  ;;  %v894_v45 = vadd.f32 %v1295_v41, %v829_v42 }
 0x11c   : > { %v1296_v46 = vpop.f32.mrb[12].mxu1  ;;  %v1257_v47 = vpop.f32.mrb[13].mxu0 }
 0x11d   : > { %v1258_v48 = vadd.f32 %v1257_v47, %v1256_v44  ;;  %v1297_v49 = vpop.f32.mrb[13].mxu1  ;;  %v1259_v50 = vpop.f32.mrb[14].mxu0 }
 0x11e   : > { %v1298_v51 = vadd.f32 %v1297_v49, %v1296_v46  ;;  %v1299_v52 = vpop.f32.mrb[14].mxu1  ;;  %v1260_v53 = vpop.f32.mrb[15].mxu0 }
 0x11f   : > { %v834_v54 = vadd.f32 %v1258_v48, %v1155_v62  ;;  %v1261_v55 = vadd.f32 %v1260_v53, %v1259_v50  ;;  %v1300_v56 = vpop.f32.mrb[15].mxu1 }
 0x120   : > { %v1301_v57 = vadd.f32 %v1300_v56, %v1299_v52 }
 0x121   : > { %v837_v58 = vadd.f32 %v1261_v55, %v1155_v62  ;;  %v899_v59 = vadd.f32 %v1298_v51, %v834_v54 }
 0x123   : > { %v902_v60 = vadd.f32 %v1301_v57, %v837_v58 }
 0x124   : > { %v1332_v61 = vpop.f32.mrb[16].mxu0 }
 0x125   : > { %v948_v0 = vadd.f32 %v1332_v61, %v883_v27  ;;  %v1336_v1 = vpop.f32.mrb[16].mxu1  ;;  %v939_v3 = vpop.f32.mrb[17].mxu0 }
 0x126   : > { %v964_v5 = vadd.f32 %v1336_v1, %v899_v59  ;;  %v940_v6 = vadd.f32 %v939_v3, %v875_v11  ;;  %v955_v62 = vpop.f32.mrb[17].mxu1  ;;  %v1333_v8 = vpop.f32.mrb[18].mxu0  ;;  %v975_v11 = vld [vmem:[%s316_s22 + $0x28] sm:$0xff] }
 0x127   : > { %v980_v10 = vadd.f32 %v972_v63, %v948_v0  ;;  %v956_v12 = vadd.f32 %v955_v62, %v891_v43  ;;  %v951_v14 = vadd.f32 %v1333_v8, %v886_v29  ;;  %v1337_v15 = vpop.f32.mrb[18].mxu1  ;;  %v942_v17 = vpop.f32.mrb[19].mxu0 }
 0x128   : > { %v984_v19 = vadd.f32 %v976_v2, %v964_v5  ;;  %v978_v20 = vadd.f32 %v970_v4, %v940_v6  ;;  %v967_v21 = vadd.f32 %v1337_v15, %v902_v60  ;;  %v943_v22 = vadd.f32 %v942_v17, %v1795_v13  ;;  %v958_v23 = vpop.f32.mrb[19].mxu1 }
 0x129   : > { %v988_v24 = vmax.f32 %v980_v10, 0.0  ;;  %v982_v25 = vadd.f32 %v974_v7, %v956_v12  ;;  %v981_v26 = vadd.f32 %v973_v9, %v951_v14  ;;  %v959_v27 = vadd.f32 %v958_v23, %v894_v45 }
 0x12a   : > { %v992_v28 = vmax.f32 %v984_v19, 0.0  ;;  %v986_v29 = vmax.f32 %v978_v20, 0.0  ;;  %v985_v30 = vadd.f32 %v977_v16, %v967_v21  ;;  %v979_v31 = vadd.f32 %v971_v18, %v943_v22 }
 0x12b   : > { %996 = vst [vmem:[%s284_s30 + $0x10] sm:$0xff] %v988_v24  ;;  %v990_v32 = vmax.f32 %v982_v25, 0.0  ;;  %v989_v33 = vmax.f32 %v981_v26, 0.0  ;;  %v983_v34 = vadd.f32 %v975_v11, %v959_v27 }
 0x12c   : > { %1000 = vst [vmem:[%s284_s30 + $0x30] sm:$0xff] %v992_v28  ;;  %994 = vst [vmem:[%s284_s30] sm:$0xff] %v986_v29  ;;  %v993_v13 = vmax.f32 %v985_v30, 0.0  ;;  %v987_v35 = vmax.f32 %v979_v31, 0.0 }
 0x12d   : > { %998 = vst [vmem:[%s284_s30 + $0x20] sm:$0xff] %v990_v32  ;;  %997 = vst [vmem:[%s284_s30 + $0x18] sm:$0xff] %v989_v33  ;;  %v991_v36 = vmax.f32 %v983_v34, 0.0 }
 0x12e   : > { %1001 = vst [vmem:[%s284_s30 + $0x38] sm:$0xff] %v993_v13  ;;  %995 = vst [vmem:[%s284_s30 + $0x8] sm:$0xff] %v987_v35 }
 0x12f   : > { %999 = vst [vmem:[%s284_s30 + $0x28] sm:$0xff] %v991_v36 }
 0x130   : > { %1493 = shalt.err (!%p1490_p5)
}
 0x131   : > { %s1494_s5 = scalar_lea.hbm %s1812_s18, 1024  ;;  %s1498_s22 = scalar_lea.hbm %s1868_s4, 2048 }
 0x132   : > { %p1495_p6 = scmp.ne.s32.totalorder %s1812_s18, %s1494_s5  ;;  %p1499_p10 = scmp.lt.u32.totalorder %s1812_s18, %s1868_s4 }
 0x133   : > { %p1500_p11 = scmp.lt.u32.totalorder %s1498_s22, %s1494_s5  ;;  %p1502_p13 = scmp.lt.u32.totalorder %s1494_s5, %s1812_s18 }
 0x134   : > { %p1496_p7 = pnand %p1495_p6, %p1628_p4 }
 0x135   : > { %p1501_p12 = por %p1500_p11, %p1499_p10 }
 0x136   : > { %p1497_p9 = pneg %p1496_p7 }
 0x137   : > { %p1503_p0 = por %p1502_p13, %p1501_p12 }
 0x139   : > { %p1504_p1 = pnand %p1503_p0, %p1497_p9 }
 0x13b   : > { %1507 = shalt.err (!%p1504_p1)
}
 0x13c   : > { %s1561_s24 = smov 128   ;;  %s1562_s30 = smov 8  }
 0x13d   : > { %1355 = dma.vmem_to_hbm [thread:$0]  (%p1628_p4), %s1814_s6, 1024, %s1812_s18, %s1818_s10, %s1561_s24, %s1561_s24, %s1562_s30  }
 0x13e PF: > { %p1361_p2 = scmp.ge.s32.totalorder %s1558_s20, 2  ;;  %s1032_s7 = sand.u32 1, %s1538_s15  }
 0x13f   : > { %s1033_s8 = scalar_lea.sflag [#allocation3], %s1032_s7 }
 0x140   : > { %p1358_p3 = pnand %p1361_p2, %p1635_p8 }
 0x142   : > { %1533 = dma.done.wait (!%p1358_p3), %s1033_s8, 1024  }
 0x143   : > { %1535 = vsyncadd (!%p1358_p3), %s1033_s8, 4294966272  ;;  %s17_s20 = sadd.s32 1, %s1558_s20   ;;  %s1871_s15 = smov %s1542_s16 }
 0x144   : > { %p14_p5 = scmp.ge.s32.totalorder %s17_s20, 4   ;;  %s1872_s16 = smov %s1546_s17 }
 0x145   : > { %s1873_s17 = smov %s1641_s28  ;;  %s1874_s18 = smov %s1554_s19 }
 0x146   : > { %s1875_s19 = smov %s1877_s23  ;;  %16 = sbr.rel (!%p14_p5) target bundleno = 4 (0x4), region = 80 }
 0x14d   :  { %1038 = vsyncpa [#allocation3], 1 }
 0x14e   :  { %1040 = vsyncpa [#allocation3 + $0x1], 1 }

</bundles_post_ra>
